<compile_context>
chip_gen: v7x
topology: tpu7x:2x2x1
jax: 0.10.0
libtpu: 0.0.40
codegen_flags: <defaults>
</compile_context>

<pallas_src>
import math
import numpy as np
import jax
import jax.numpy as jnp
from jax import lax
from jax.experimental import pallas as pl
from jax.experimental.pallas import tpu as pltpu


# ----------------------------- Pallas kernel -------------------------------

def _cross_attn_kernel(xkv_ref, xq_ref, gmat_ref, seg_ref, segt_ref,
                       wq_ref, wk_ref, wv_ref, wout_ref, pkv_ref, pq_ref,
                       out_ref):
    # Grid: (branch,).  r == 0 -> output A (queries from x_B, keys/values/
    # out-proj/residual from x_A); r == 1 -> output B (swapped).  All branch
    # routing is done by the index_maps, so the kernel body is branch-agnostic.
    x_kv = xkv_ref[0]             # (C, BS) raw (pre-norm) kv / residual source
    x_q = xq_ref[0]               # (C, BS) raw (pre-norm) query source
    gmat = gmat_ref[...]          # (C, C) block-diagonal group-average matrix
    seg = seg_ref[...]            # (BS, B) batch-segment indicator
    segt = segt_ref[...]          # (B, BS) == seg.T (precomputed in wrapper)

    C, BS = x_kv.shape
    B = seg.shape[1]
    S = BS // B
    inv_s = 1.0 / float(S)

    # Per-branch small params, columns = [gamma, beta, out_bias].
    p_kv = pkv_ref[0]             # (C, 3) params of the kv-side branch
    p_q = pq_ref[0]               # (C, 3) params of the query-side branch
    gamma_kv, beta_kv, bias_out = p_kv[:, 0:1], p_kv[:, 1:2], p_kv[:, 2:3]
    gamma_q, beta_q = p_q[:, 0:1], p_q[:, 1:2]

    def group_norm(x, gamma, beta):
        # Lane-reduce first: per-(channel, batch) sums over each batch's S
        # lanes via the tiny segment matmul, then average channels within a
        # group with the (C, C) block-diagonal matrix (entries 1/gsize).
        s1 = jnp.dot(x, seg, preferred_element_type=jnp.float32)          # (C, B)
        s2 = jnp.dot(x * x, seg, preferred_element_type=jnp.float32)      # (C, B)
        mean = jnp.dot(gmat, s1, preferred_element_type=jnp.float32) * inv_s   # (C, B)
        ex2 = jnp.dot(gmat, s2, preferred_element_type=jnp.float32) * inv_s    # (C, B)
        # E[x^2] - mean^2 in f32; fine for roughly zero-mean activations.
        inv = lax.rsqrt(ex2 - mean * mean + 1e-5)                         # (C, B)
        # Broadcast the per-(group, batch) stats back onto each batch segment.
        mean_f = jnp.dot(mean, segt, preferred_element_type=jnp.float32)  # (C, BS)
        inv_f = jnp.dot(inv, segt, preferred_element_type=jnp.float32)    # (C, BS)
        return (x - mean_f) * (inv_f * gamma) + beta

    xkv_n = group_norm(x_kv, gamma_kv, beta_kv)    # (C, BS) f32
    xq_n = group_norm(x_q, gamma_q, beta_q)        # (C, BS) f32

    wq = wq_ref[0]      # (C, C); 1/sqrt(C) attention scale already folded in
    wk = wk_ref[0]
    wv = wv_ref[0]
    wo = wout_ref[0]

    # 1x1 convs == channel matmuls, fat over the B*S lane dimension.
    # q is produced directly transposed: qt[j, o] = sum_c xq_n[c, j] * wq[o, c].
    qt = lax.dot_general(xq_n, wq, dimension_numbers=(((0,), (1,)), ((), ())),
                         preferred_element_type=jnp.float32)      # (BS, C)
    k = jnp.dot(wk, xkv_n, preferred_element_type=jnp.float32)    # (C, BS)
    v = jnp.dot(wv, xkv_n, preferred_element_type=jnp.float32)    # (C, BS)

    # Per-batch attention; B is a small static trip count (unrolled).
    outs = []
    for b in range(B):
        lo = b * S
        qt_b = qt[lo:lo + S, :]       # (S, C)
        k_b = k[:, lo:lo + S]         # (C, S)
        v_b = v[:, lo:lo + S]         # (C, S)
        s = jnp.dot(qt_b, k_b, preferred_element_type=jnp.float32)   # (S, S)
        m = jnp.max(s, axis=-1, keepdims=True)
        p = jnp.exp(s - m)
        denom = jnp.sum(p, axis=-1, keepdims=True)
        p = p * (1.0 / denom)         # (S, 1) reciprocal; exact
        # o_b[c, i] = sum_j v_b[c, j] * p[i, j]  -> NT contraction, no relayout
        o_b = lax.dot_general(v_b, p, dimension_numbers=(((1,), (1,)), ((), ())),
                              preferred_element_type=jnp.float32)    # (C, S)
        outs.append(o_b)
    o = jnp.concatenate(outs, axis=-1) if B > 1 else outs[0]          # (C, BS)

    # Output 1x1 conv + bias + residual (residual is the post-norm kv input,
    # matching the PyTorch module which adds the re-assigned normed x).
    y = jnp.dot(wo, o, preferred_element_type=jnp.float32) + bias_out + xkv_n
    out_ref[0] = y.astype(out_ref.dtype)


# ------------------------------- wrapper -------------------------------------

def cross_attention_forward(x_A, x_B, params, norm_groups=16):
    """x_A, x_B: NCHW float32.  Returns (out_A, out_B) in NCHW.  n_head == 1."""
    B, C, H, W = x_A.shape
    S = H * W
    BS = B * S

    # Channel-first with batch folded into the lane dimension: (C, B*S).
    def to_cf(x):
        return (x.reshape(B, C, S).astype(jnp.float32)
                 .transpose(1, 0, 2).reshape(C, BS))

    x_st = jnp.stack([to_cf(x_A), to_cf(x_B)])                       # (2, C, BS)

    # Split fused QKV conv weights into lane-dense (C, C) slices and fold the
    # 1/sqrt(C) attention scale into the Q weights.
    inv_sqrt_c = 1.0 / math.sqrt(C)
    wqA, wkA, wvA = (params["wqkvA"][0:C], params["wqkvA"][C:2 * C],
                     params["wqkvA"][2 * C:3 * C])
    wqB, wkB, wvB = (params["wqkvB"][0:C], params["wqkvB"][C:2 * C],
                     params["wqkvB"][2 * C:3 * C])
    wq_st = jnp.stack([wqA, wqB]).astype(jnp.float32) * inv_sqrt_c   # (2, C, C)
    wk_st = jnp.stack([wkA, wkB]).astype(jnp.float32)                # (2, C, C)
    wv_st = jnp.stack([wvA, wvB]).astype(jnp.float32)                # (2, C, C)
    wout_st = jnp.stack([params["woutA"], params["woutB"]]).astype(jnp.float32)

    # Per-branch small vectors packed once: columns = [gamma, beta, out_bias].
    pars = jnp.stack([
        jnp.stack([params["gnA_w"], params["gnA_b"], params["boutA"]], axis=-1),
        jnp.stack([params["gnB_w"], params["gnB_b"], params["boutB"]], axis=-1),
    ]).astype(jnp.float32)                                           # (2, C, 3)

    # Block-diagonal group-average matrix for the fused GroupNorm (f32 exact).
    gsize = C // norm_groups
    cid = jnp.arange(C) // gsize
    gmat = (cid[:, None] == cid[None, :]).astype(jnp.float32) / float(gsize)

    # Batch-segment indicator (lane j belongs to batch j // S) and its transpose.
    seg_ids = jnp.arange(BS) // S
    segmat = (seg_ids[:, None] == jnp.arange(B)[None, :]).astype(jnp.float32)  # (BS, B)
    segmat_t = segmat.T                                                        # (B, BS)

    x_kv_spec = pl.BlockSpec((1, C, BS), lambda r: (r, 0, 0))
    x_q_spec = pl.BlockSpec((1, C, BS), lambda r: (1 - r, 0, 0))
    gmat_spec = pl.BlockSpec((C, C), lambda r: (0, 0))
    seg_spec = pl.BlockSpec((BS, B), lambda r: (0, 0))
    segt_spec = pl.BlockSpec((B, BS), lambda r: (0, 0))
    w_q_spec = pl.BlockSpec((1, C, C), lambda r: (1 - r, 0, 0))
    w_kv_spec = pl.BlockSpec((1, C, C), lambda r: (r, 0, 0))
    pars_kv_spec = pl.BlockSpec((1, C, 3), lambda r: (r, 0, 0))
    pars_q_spec = pl.BlockSpec((1, C, 3), lambda r: (1 - r, 0, 0))
    out_spec = pl.BlockSpec((1, C, BS), lambda r: (r, 0, 0))

    # Advisory cost hint for XLA's scheduler.
    flops = 2 * (8 * C * C * BS + 4 * B * C * S * S)
    cost = pl.CostEstimate(
        flops=flops,
        transcendentals=2 * B * S * S,
        bytes_accessed=4 * (4 * C * BS + 8 * C * C + 2 * C * BS + 4 * C * 3),
    )

    out_st = pl.pallas_call(
        _cross_attn_kernel,
        out_shape=jax.ShapeDtypeStruct((2, C, BS), jnp.float32),
        grid_spec=pltpu.PrefetchScalarGridSpec(
            num_scalar_prefetch=0,
            grid=(2,),
            in_specs=[x_kv_spec, x_q_spec, gmat_spec, seg_spec, segt_spec,
                      w_q_spec, w_kv_spec, w_kv_spec, w_kv_spec,
                      pars_kv_spec, pars_q_spec],
            out_specs=out_spec,
        ),
        compiler_params=pltpu.CompilerParams(
            dimension_semantics=("parallel",)),
        cost_estimate=cost,
    )(x_st, x_st, gmat, segmat, segmat_t,
      wq_st, wk_st, wv_st, wout_st, pars, pars)

    # (2, C, B*S) -> per-branch NCHW (layout plumbing outside the kernel).
    out = out_st.reshape(2, C, B, S).transpose(0, 2, 1, 3).reshape(2, B, C, H, W)
    return out[0], out[1]


# ------------------------ pure-JAX reference (torch semantics) ---------------

def group_norm_ref(x_nchw, gamma, beta, groups, eps=1e-5):
    B, C, H, W = x_nchw.shape
    xg = x_nchw.reshape(B, groups, C // groups, H, W)
    mean = xg.mean(axis=(2, 3, 4), keepdims=True)
    var = xg.var(axis=(2, 3, 4), keepdims=True)
    xg = (xg - mean) / jnp.sqrt(var + eps)
    x = xg.reshape(B, C, H, W)
    return x * gamma[None, :, None, None] + beta[None, :, None, None]


def cross_attention_reference(x_A, x_B, params, norm_groups=16):
    B, C, H, W = x_A.shape
    xa = group_norm_ref(x_A, params["gnA_w"], params["gnA_b"], norm_groups)
    xb = group_norm_ref(x_B, params["gnB_w"], params["gnB_b"], norm_groups)

    qkvA = jnp.einsum('oc,bchw->bohw', params["wqkvA"], xa)
    qkvB = jnp.einsum('oc,bchw->bohw', params["wqkvB"], xb)
    qA, kA, vA = jnp.split(qkvA, 3, axis=1)
    qB, kB, vB = jnp.split(qkvB, 3, axis=1)

    def attend(q, k, v):
        attn = jnp.einsum('bchw,bcyx->bhwyx', q, k) / math.sqrt(C)
        attn = attn.reshape(B, H, W, H * W)
        attn = jax.nn.softmax(attn, axis=-1).reshape(B, H, W, H, W)
        return jnp.einsum('bhwyx,bcyx->bchw', attn, v)

    oA = attend(qB, kA, vA)
    oB = attend(qA, kB, vB)
    outA = (jnp.einsum('oc,bchw->bohw', params["woutA"], oA)
            + params["boutA"][None, :, None, None] + xa)
    outB = (jnp.einsum('oc,bchw->bohw', params["woutB"], oB)
            + params["boutB"][None, :, None, None] + xb)
    return outA, outB


# --------------------------------- main --------------------------------------

if __name__ == "__main__":
    B, C, H, W = 2, 32, 8, 8          # norm_groups=16 requires C % 16 == 0; B*H*W = 128 lanes
    norm_groups = 16
    key = jax.random.PRNGKey(0)
    ks = jax.random.split(key, 12)

    params = {
        "gnA_w": 1.0 + 0.1 * jax.random.normal(ks[0], (C,), jnp.float32),
        "gnA_b": 0.1 * jax.random.normal(ks[1], (C,), jnp.float32),
        "gnB_w": 1.0 + 0.1 * jax.random.normal(ks[2], (C,), jnp.float32),
        "gnB_b": 0.1 * jax.random.normal(ks[3], (C,), jnp.float32),
        # 1x1 conv weights in torch layout (out_channels, in_channels)
        "wqkvA": 0.1 * jax.random.normal(ks[4], (3 * C, C), jnp.float32),
        "wqkvB": 0.1 * jax.random.normal(ks[5], (3 * C, C), jnp.float32),
        "woutA": 0.1 * jax.random.normal(ks[6], (C, C), jnp.float32),
        "boutA": 0.1 * jax.random.normal(ks[7], (C,), jnp.float32),
        "woutB": 0.1 * jax.random.normal(ks[8], (C, C), jnp.float32),
        "boutB": 0.1 * jax.random.normal(ks[9], (C,), jnp.float32),
    }

    x_A = jax.random.normal(ks[10], (B, C, H, W), jnp.float32)
    x_B = jax.random.normal(ks[11], (B, C, H, W), jnp.float32)

    out_A, out_B = cross_attention_forward(x_A, x_B, params, norm_groups)
    out_A = jax.block_until_ready(out_A)
    out_B = jax.block_until_ready(out_B)

    ref_A, ref_B = cross_attention_reference(x_A, x_B, params, norm_groups)
    # f32 everywhere; tolerance covers the TPU MXU's default f32 matmul precision.
    np.testing.assert_allclose(np.asarray(out_A), np.asarray(ref_A), atol=2e-2, rtol=2e-2)
    np.testing.assert_allclose(np.asarray(out_B), np.asarray(ref_B), atol=2e-2, rtol=2e-2)

    print("KERNEL_OK")
</pallas_src>

<mosaic_0001>
module attributes {stable_mosaic.version = 11 : i64} {
  func.func @_cross_attn_kernel(%arg0: i32, %arg1: memref<1x32x128xf32, #tpu.memory_space<vmem>>, %arg2: memref<1x32x128xf32, #tpu.memory_space<vmem>>, %arg3: memref<32x32xf32, #tpu.memory_space<vmem>>, %arg4: memref<128x2xf32, #tpu.memory_space<vmem>>, %arg5: memref<2x128xf32, #tpu.memory_space<vmem>>, %arg6: memref<1x32x32xf32, #tpu.memory_space<vmem>>, %arg7: memref<1x32x32xf32, #tpu.memory_space<vmem>>, %arg8: memref<1x32x32xf32, #tpu.memory_space<vmem>>, %arg9: memref<1x32x32xf32, #tpu.memory_space<vmem>>, %arg10: memref<1x32x3xf32, #tpu.memory_space<vmem>>, %arg11: memref<1x32x3xf32, #tpu.memory_space<vmem>>, %arg12: memref<1x32x128xf32, #tpu.memory_space<vmem>>) attributes {dimension_semantics = [#tpu.dimension_semantics<parallel>], iteration_bounds = array<i64: 2>, scalar_prefetch = 0 : i64, scratch_operands = 0 : i64, tpu.core_type = #tpu.core_type<tc>, window_params = [{transform_indices = @transform_0, window_bounds = array<i64: 1, 32, 128>}, {transform_indices = @transform_1, window_bounds = array<i64: 1, 32, 128>}, {pipeline_mode = #tpu.pipeline_mode<synchronous>, transform_indices = @transform_2, window_bounds = array<i64: 32, 32>}, {pipeline_mode = #tpu.pipeline_mode<synchronous>, transform_indices = @transform_3, window_bounds = array<i64: 128, 2>}, {pipeline_mode = #tpu.pipeline_mode<synchronous>, transform_indices = @transform_4, window_bounds = array<i64: 2, 128>}, {transform_indices = @transform_5, window_bounds = array<i64: 1, 32, 32>}, {transform_indices = @transform_6, window_bounds = array<i64: 1, 32, 32>}, {transform_indices = @transform_7, window_bounds = array<i64: 1, 32, 32>}, {transform_indices = @transform_8, window_bounds = array<i64: 1, 32, 32>}, {transform_indices = @transform_9, window_bounds = array<i64: 1, 32, 3>}, {transform_indices = @transform_10, window_bounds = array<i64: 1, 32, 3>}, {transform_indices = @transform_11, window_bounds = array<i64: 1, 32, 128>}]} {
    %c0 = arith.constant 0 : index
    %c0_0 = arith.constant 0 : index
    %c0_1 = arith.constant 0 : index
    %0 = vector.load %arg1[%c0, %c0_0, %c0_1] : memref<1x32x128xf32, #tpu.memory_space<vmem>>, vector<1x32x128xf32>
    %1 = vector.shape_cast %0 : vector<1x32x128xf32> to vector<32x128xf32>
    %c0_2 = arith.constant 0 : index
    %c0_3 = arith.constant 0 : index
    %c0_4 = arith.constant 0 : index
    %2 = vector.load %arg2[%c0_2, %c0_3, %c0_4] : memref<1x32x128xf32, #tpu.memory_space<vmem>>, vector<1x32x128xf32>
    %3 = vector.shape_cast %2 : vector<1x32x128xf32> to vector<32x128xf32>
    %c0_5 = arith.constant 0 : index
    %c0_6 = arith.constant 0 : index
    %4 = vector.load %arg3[%c0_5, %c0_6] : memref<32x32xf32, #tpu.memory_space<vmem>>, vector<32x32xf32>
    %c0_7 = arith.constant 0 : index
    %c0_8 = arith.constant 0 : index
    %5 = vector.load %arg4[%c0_7, %c0_8] : memref<128x2xf32, #tpu.memory_space<vmem>>, vector<128x2xf32>
    %c0_9 = arith.constant 0 : index
    %c0_10 = arith.constant 0 : index
    %6 = vector.load %arg5[%c0_9, %c0_10] : memref<2x128xf32, #tpu.memory_space<vmem>>, vector<2x128xf32>
    %c0_11 = arith.constant 0 : index
    %c0_12 = arith.constant 0 : index
    %c0_13 = arith.constant 0 : index
    %7 = vector.load %arg10[%c0_11, %c0_12, %c0_13] : memref<1x32x3xf32, #tpu.memory_space<vmem>>, vector<1x32x3xf32>
    %8 = vector.shape_cast %7 : vector<1x32x3xf32> to vector<32x3xf32>
    %c0_14 = arith.constant 0 : index
    %c0_15 = arith.constant 0 : index
    %c0_16 = arith.constant 0 : index
    %9 = vector.load %arg11[%c0_14, %c0_15, %c0_16] : memref<1x32x3xf32, #tpu.memory_space<vmem>>, vector<1x32x3xf32>
    %10 = vector.shape_cast %9 : vector<1x32x3xf32> to vector<32x3xf32>
    %11 = vector.extract_strided_slice %8 {offsets = [0, 0], sizes = [32, 1], strides = [1, 1]} : vector<32x3xf32> to vector<32x1xf32>
    %12 = vector.extract_strided_slice %8 {offsets = [0, 1], sizes = [32, 1], strides = [1, 1]} : vector<32x3xf32> to vector<32x1xf32>
    %13 = vector.extract_strided_slice %8 {offsets = [0, 2], sizes = [32, 1], strides = [1, 1]} : vector<32x3xf32> to vector<32x1xf32>
    %14 = vector.extract_strided_slice %10 {offsets = [0, 0], sizes = [32, 1], strides = [1, 1]} : vector<32x3xf32> to vector<32x1xf32>
    %15 = vector.extract_strided_slice %10 {offsets = [0, 1], sizes = [32, 1], strides = [1, 1]} : vector<32x3xf32> to vector<32x1xf32>
    %cst = arith.constant dense<0.000000e+00> : vector<32x2xf32>
    %16 = tpu.matmul %1, %5, %cst {dimension_numbers = #tpu.dot_dimension_numbers<[1], [0], [0], [1], [0, 0, 1, 1], [], []>} : vector<32x128xf32>, vector<128x2xf32>, vector<32x2xf32> -> vector<32x2xf32>
    %17 = arith.mulf %1, %1 : vector<32x128xf32>
    %cst_17 = arith.constant dense<0.000000e+00> : vector<32x2xf32>
    %18 = tpu.matmul %17, %5, %cst_17 {dimension_numbers = #tpu.dot_dimension_numbers<[1], [0], [0], [1], [0, 0, 1, 1], [], []>} : vector<32x128xf32>, vector<128x2xf32>, vector<32x2xf32> -> vector<32x2xf32>
    %cst_18 = arith.constant dense<0.000000e+00> : vector<32x2xf32>
    %19 = tpu.matmul %4, %16, %cst_18 {dimension_numbers = #tpu.dot_dimension_numbers<[1], [0], [0], [1], [0, 0, 1, 1], [], []>} : vector<32x32xf32>, vector<32x2xf32>, vector<32x2xf32> -> vector<32x2xf32>
    %cst_19 = arith.constant 1.562500e-02 : f32
    %20 = vector.broadcast %cst_19 : f32 to vector<32x2xf32>
    %21 = arith.mulf %19, %20 : vector<32x2xf32>
    %cst_20 = arith.constant dense<0.000000e+00> : vector<32x2xf32>
    %22 = tpu.matmul %4, %18, %cst_20 {dimension_numbers = #tpu.dot_dimension_numbers<[1], [0], [0], [1], [0, 0, 1, 1], [], []>} : vector<32x32xf32>, vector<32x2xf32>, vector<32x2xf32> -> vector<32x2xf32>
    %cst_21 = arith.constant 1.562500e-02 : f32
    %23 = vector.broadcast %cst_21 : f32 to vector<32x2xf32>
    %24 = arith.mulf %22, %23 : vector<32x2xf32>
    %25 = arith.mulf %21, %21 : vector<32x2xf32>
    %26 = arith.subf %24, %25 : vector<32x2xf32>
    %cst_22 = arith.constant 9.99999974E-6 : f32
    %27 = vector.broadcast %cst_22 : f32 to vector<32x2xf32>
    %28 = arith.addf %26, %27 : vector<32x2xf32>
    %29 = math.rsqrt %28 : vector<32x2xf32>
    %cst_23 = arith.constant dense<0.000000e+00> : vector<32x128xf32>
    %30 = tpu.matmul %21, %6, %cst_23 {dimension_numbers = #tpu.dot_dimension_numbers<[1], [0], [0], [1], [0, 0, 1, 1], [], []>} : vector<32x2xf32>, vector<2x128xf32>, vector<32x128xf32> -> vector<32x128xf32>
    %cst_24 = arith.constant dense<0.000000e+00> : vector<32x128xf32>
    %31 = tpu.matmul %29, %6, %cst_24 {dimension_numbers = #tpu.dot_dimension_numbers<[1], [0], [0], [1], [0, 0, 1, 1], [], []>} : vector<32x2xf32>, vector<2x128xf32>, vector<32x128xf32> -> vector<32x128xf32>
    %32 = arith.subf %1, %30 : vector<32x128xf32>
    %33 = vector.broadcast %11 : vector<32x1xf32> to vector<32x128xf32>
    %34 = arith.mulf %31, %33 : vector<32x128xf32>
    %35 = arith.mulf %32, %34 : vector<32x128xf32>
    %36 = vector.broadcast %12 : vector<32x1xf32> to vector<32x128xf32>
    %37 = arith.addf %35, %36 : vector<32x128xf32>
    %cst_25 = arith.constant dense<0.000000e+00> : vector<32x2xf32>
    %38 = tpu.matmul %3, %5, %cst_25 {dimension_numbers = #tpu.dot_dimension_numbers<[1], [0], [0], [1], [0, 0, 1, 1], [], []>} : vector<32x128xf32>, vector<128x2xf32>, vector<32x2xf32> -> vector<32x2xf32>
    %39 = arith.mulf %3, %3 : vector<32x128xf32>
    %cst_26 = arith.constant dense<0.000000e+00> : vector<32x2xf32>
    %40 = tpu.matmul %39, %5, %cst_26 {dimension_numbers = #tpu.dot_dimension_numbers<[1], [0], [0], [1], [0, 0, 1, 1], [], []>} : vector<32x128xf32>, vector<128x2xf32>, vector<32x2xf32> -> vector<32x2xf32>
    %cst_27 = arith.constant dense<0.000000e+00> : vector<32x2xf32>
    %41 = tpu.matmul %4, %38, %cst_27 {dimension_numbers = #tpu.dot_dimension_numbers<[1], [0], [0], [1], [0, 0, 1, 1], [], []>} : vector<32x32xf32>, vector<32x2xf32>, vector<32x2xf32> -> vector<32x2xf32>
    %cst_28 = arith.constant 1.562500e-02 : f32
    %42 = vector.broadcast %cst_28 : f32 to vector<32x2xf32>
    %43 = arith.mulf %41, %42 : vector<32x2xf32>
    %cst_29 = arith.constant dense<0.000000e+00> : vector<32x2xf32>
    %44 = tpu.matmul %4, %40, %cst_29 {dimension_numbers = #tpu.dot_dimension_numbers<[1], [0], [0], [1], [0, 0, 1, 1], [], []>} : vector<32x32xf32>, vector<32x2xf32>, vector<32x2xf32> -> vector<32x2xf32>
    %cst_30 = arith.constant 1.562500e-02 : f32
    %45 = vector.broadcast %cst_30 : f32 to vector<32x2xf32>
    %46 = arith.mulf %44, %45 : vector<32x2xf32>
    %47 = arith.mulf %43, %43 : vector<32x2xf32>
    %48 = arith.subf %46, %47 : vector<32x2xf32>
    %cst_31 = arith.constant 9.99999974E-6 : f32
    %49 = vector.broadcast %cst_31 : f32 to vector<32x2xf32>
    %50 = arith.addf %48, %49 : vector<32x2xf32>
    %51 = math.rsqrt %50 : vector<32x2xf32>
    %cst_32 = arith.constant dense<0.000000e+00> : vector<32x128xf32>
    %52 = tpu.matmul %43, %6, %cst_32 {dimension_numbers = #tpu.dot_dimension_numbers<[1], [0], [0], [1], [0, 0, 1, 1], [], []>} : vector<32x2xf32>, vector<2x128xf32>, vector<32x128xf32> -> vector<32x128xf32>
    %cst_33 = arith.constant dense<0.000000e+00> : vector<32x128xf32>
    %53 = tpu.matmul %51, %6, %cst_33 {dimension_numbers = #tpu.dot_dimension_numbers<[1], [0], [0], [1], [0, 0, 1, 1], [], []>} : vector<32x2xf32>, vector<2x128xf32>, vector<32x128xf32> -> vector<32x128xf32>
    %54 = arith.subf %3, %52 : vector<32x128xf32>
    %55 = vector.broadcast %14 : vector<32x1xf32> to vector<32x128xf32>
    %56 = arith.mulf %53, %55 : vector<32x128xf32>
    %57 = arith.mulf %54, %56 : vector<32x128xf32>
    %58 = vector.broadcast %15 : vector<32x1xf32> to vector<32x128xf32>
    %59 = arith.addf %57, %58 : vector<32x128xf32>
    %c0_34 = arith.constant 0 : index
    %c0_35 = arith.constant 0 : index
    %c0_36 = arith.constant 0 : index
    %60 = vector.load %arg6[%c0_34, %c0_35, %c0_36] : memref<1x32x32xf32, #tpu.memory_space<vmem>>, vector<1x32x32xf32>
    %61 = vector.shape_cast %60 : vector<1x32x32xf32> to vector<32x32xf32>
    %c0_37 = arith.constant 0 : index
    %c0_38 = arith.constant 0 : index
    %c0_39 = arith.constant 0 : index
    %62 = vector.load %arg7[%c0_37, %c0_38, %c0_39] : memref<1x32x32xf32, #tpu.memory_space<vmem>>, vector<1x32x32xf32>
    %63 = vector.shape_cast %62 : vector<1x32x32xf32> to vector<32x32xf32>
    %c0_40 = arith.constant 0 : index
    %c0_41 = arith.constant 0 : index
    %c0_42 = arith.constant 0 : index
    %64 = vector.load %arg8[%c0_40, %c0_41, %c0_42] : memref<1x32x32xf32, #tpu.memory_space<vmem>>, vector<1x32x32xf32>
    %65 = vector.shape_cast %64 : vector<1x32x32xf32> to vector<32x32xf32>
    %c0_43 = arith.constant 0 : index
    %c0_44 = arith.constant 0 : index
    %c0_45 = arith.constant 0 : index
    %66 = vector.load %arg9[%c0_43, %c0_44, %c0_45] : memref<1x32x32xf32, #tpu.memory_space<vmem>>, vector<1x32x32xf32>
    %67 = vector.shape_cast %66 : vector<1x32x32xf32> to vector<32x32xf32>
    %cst_46 = arith.constant dense<0.000000e+00> : vector<128x32xf32>
    %68 = tpu.matmul %59, %61, %cst_46 {dimension_numbers = #tpu.dot_dimension_numbers<[0], [1], [1], [0], [0, 1, 1, 0], [], []>} : vector<32x128xf32>, vector<32x32xf32>, vector<128x32xf32> -> vector<128x32xf32>
    %cst_47 = arith.constant dense<0.000000e+00> : vector<32x128xf32>
    %69 = tpu.matmul %63, %37, %cst_47 {dimension_numbers = #tpu.dot_dimension_numbers<[1], [0], [0], [1], [0, 0, 1, 1], [], []>} : vector<32x32xf32>, vector<32x128xf32>, vector<32x128xf32> -> vector<32x128xf32>
    %cst_48 = arith.constant dense<0.000000e+00> : vector<32x128xf32>
    %70 = tpu.matmul %65, %37, %cst_48 {dimension_numbers = #tpu.dot_dimension_numbers<[1], [0], [0], [1], [0, 0, 1, 1], [], []>} : vector<32x32xf32>, vector<32x128xf32>, vector<32x128xf32> -> vector<32x128xf32>
    %71 = vector.extract_strided_slice %68 {offsets = [0, 0], sizes = [64, 32], strides = [1, 1]} : vector<128x32xf32> to vector<64x32xf32>
    %72 = vector.extract_strided_slice %69 {offsets = [0, 0], sizes = [32, 64], strides = [1, 1]} : vector<32x128xf32> to vector<32x64xf32>
    %73 = vector.extract_strided_slice %70 {offsets = [0, 0], sizes = [32, 64], strides = [1, 1]} : vector<32x128xf32> to vector<32x64xf32>
    %cst_49 = arith.constant dense<0.000000e+00> : vector<64x64xf32>
    %74 = tpu.matmul %71, %72, %cst_49 {dimension_numbers = #tpu.dot_dimension_numbers<[1], [0], [0], [1], [0, 0, 1, 1], [], []>} : vector<64x32xf32>, vector<32x64xf32>, vector<64x64xf32> -> vector<64x64xf32>
    %cst_50 = arith.constant dense<0xFF800000> : vector<64xf32>
    %75 = vector.multi_reduction <maximumf>, %74, %cst_50 [1] : vector<64x64xf32> to vector<64xf32>
    %76 = vector.shape_cast %75 : vector<64xf32> to vector<64x1xf32>
    %77 = vector.broadcast %76 : vector<64x1xf32> to vector<64x64xf32>
    %78 = arith.subf %74, %77 : vector<64x64xf32>
    %79 = math.exp %78 : vector<64x64xf32>
    %cst_51 = arith.constant dense<0.000000e+00> : vector<64xf32>
    %80 = vector.multi_reduction <add>, %79, %cst_51 [1] : vector<64x64xf32> to vector<64xf32>
    %81 = vector.shape_cast %80 : vector<64xf32> to vector<64x1xf32>
    %cst_52 = arith.constant 1.000000e+00 : f32
    %82 = vector.broadcast %cst_52 : f32 to vector<64x1xf32>
    %83 = arith.divf %82, %81 : vector<64x1xf32>
    %84 = vector.broadcast %83 : vector<64x1xf32> to vector<64x64xf32>
    %85 = arith.mulf %79, %84 : vector<64x64xf32>
    %cst_53 = arith.constant dense<0.000000e+00> : vector<32x64xf32>
    %86 = tpu.matmul %73, %85, %cst_53 {dimension_numbers = #tpu.dot_dimension_numbers<[1], [1], [0], [0], [0, 0, 1, 0], [], []>} : vector<32x64xf32>, vector<64x64xf32>, vector<32x64xf32> -> vector<32x64xf32>
    %87 = vector.extract_strided_slice %68 {offsets = [64, 0], sizes = [64, 32], strides = [1, 1]} : vector<128x32xf32> to vector<64x32xf32>
    %88 = vector.extract_strided_slice %69 {offsets = [0, 64], sizes = [32, 64], strides = [1, 1]} : vector<32x128xf32> to vector<32x64xf32>
    %89 = vector.extract_strided_slice %70 {offsets = [0, 64], sizes = [32, 64], strides = [1, 1]} : vector<32x128xf32> to vector<32x64xf32>
    %cst_54 = arith.constant dense<0.000000e+00> : vector<64x64xf32>
    %90 = tpu.matmul %87, %88, %cst_54 {dimension_numbers = #tpu.dot_dimension_numbers<[1], [0], [0], [1], [0, 0, 1, 1], [], []>} : vector<64x32xf32>, vector<32x64xf32>, vector<64x64xf32> -> vector<64x64xf32>
    %cst_55 = arith.constant dense<0xFF800000> : vector<64xf32>
    %91 = vector.multi_reduction <maximumf>, %90, %cst_55 [1] : vector<64x64xf32> to vector<64xf32>
    %92 = vector.shape_cast %91 : vector<64xf32> to vector<64x1xf32>
    %93 = vector.broadcast %92 : vector<64x1xf32> to vector<64x64xf32>
    %94 = arith.subf %90, %93 : vector<64x64xf32>
    %95 = math.exp %94 : vector<64x64xf32>
    %cst_56 = arith.constant dense<0.000000e+00> : vector<64xf32>
    %96 = vector.multi_reduction <add>, %95, %cst_56 [1] : vector<64x64xf32> to vector<64xf32>
    %97 = vector.shape_cast %96 : vector<64xf32> to vector<64x1xf32>
    %cst_57 = arith.constant 1.000000e+00 : f32
    %98 = vector.broadcast %cst_57 : f32 to vector<64x1xf32>
    %99 = arith.divf %98, %97 : vector<64x1xf32>
    %100 = vector.broadcast %99 : vector<64x1xf32> to vector<64x64xf32>
    %101 = arith.mulf %95, %100 : vector<64x64xf32>
    %cst_58 = arith.constant dense<0.000000e+00> : vector<32x64xf32>
    %102 = tpu.matmul %89, %101, %cst_58 {dimension_numbers = #tpu.dot_dimension_numbers<[1], [1], [0], [0], [0, 0, 1, 0], [], []>} : vector<32x64xf32>, vector<64x64xf32>, vector<32x64xf32> -> vector<32x64xf32>
    %103 = tpu.concatenate %86, %102 in 1 : vector<32x64xf32>, vector<32x64xf32> -> vector<32x128xf32>
    %cst_59 = arith.constant dense<0.000000e+00> : vector<32x128xf32>
    %104 = tpu.matmul %67, %103, %cst_59 {dimension_numbers = #tpu.dot_dimension_numbers<[1], [0], [0], [1], [0, 0, 1, 1], [], []>} : vector<32x32xf32>, vector<32x128xf32>, vector<32x128xf32> -> vector<32x128xf32>
    %105 = vector.broadcast %13 : vector<32x1xf32> to vector<32x128xf32>
    %106 = arith.addf %104, %105 : vector<32x128xf32>
    %107 = arith.addf %106, %37 : vector<32x128xf32>
    %c0_60 = arith.constant 0 : index
    %c0_61 = arith.constant 0 : index
    %c0_62 = arith.constant 0 : index
    %108 = vector.load %arg12[%c0_60, %c0_61, %c0_62] : memref<1x32x128xf32, #tpu.memory_space<vmem>>, vector<1x32x128xf32>
    %109 = vector.shape_cast %108 : vector<1x32x128xf32> to vector<32x128xf32>
    %110 = vector.shape_cast %107 : vector<32x128xf32> to vector<1x32x128xf32>
    tpu.vector_store %arg12[%c0_60, %c0_61, %c0_62], %110 {strides = array<i32>} : memref<1x32x128xf32, #tpu.memory_space<vmem>>, vector<1x32x128xf32>,
    return
  }
  func.func @transform_0(%arg0: i32) -> (i32, i32, i32) {
    %c0_i32 = arith.constant 0 : i32
    %c0_i32_0 = arith.constant 0 : i32
    %c0_i32_1 = arith.constant 0 : i32
    return %arg0, %c0_i32, %c0_i32_0 : i32, i32, i32
  }
  func.func @transform_1(%arg0: i32) -> (i32, i32, i32) {
    %c1_i32 = arith.constant 1 : i32
    %0 = arith.subi %c1_i32, %arg0 : i32
    %c0_i32 = arith.constant 0 : i32
    %c0_i32_0 = arith.constant 0 : i32
    %c0_i32_1 = arith.constant 0 : i32
    return %0, %c0_i32, %c0_i32_0 : i32, i32, i32
  }
  func.func @transform_2(%arg0: i32) -> (i32, i32) {
    %c0_i32 = arith.constant 0 : i32
    %c0_i32_0 = arith.constant 0 : i32
    %c0_i32_1 = arith.constant 0 : i32
    return %c0_i32, %c0_i32_0 : i32, i32
  }
  func.func @transform_3(%arg0: i32) -> (i32, i32) {
    %c0_i32 = arith.constant 0 : i32
    %c0_i32_0 = arith.constant 0 : i32
    %c0_i32_1 = arith.constant 0 : i32
    return %c0_i32, %c0_i32_0 : i32, i32
  }
  func.func @transform_4(%arg0: i32) -> (i32, i32) {
    %c0_i32 = arith.constant 0 : i32
    %c0_i32_0 = arith.constant 0 : i32
    %c0_i32_1 = arith.constant 0 : i32
    return %c0_i32, %c0_i32_0 : i32, i32
  }
  func.func @transform_5(%arg0: i32) -> (i32, i32, i32) {
    %c1_i32 = arith.constant 1 : i32
    %0 = arith.subi %c1_i32, %arg0 : i32
    %c0_i32 = arith.constant 0 : i32
    %c0_i32_0 = arith.constant 0 : i32
    %c0_i32_1 = arith.constant 0 : i32
    return %0, %c0_i32, %c0_i32_0 : i32, i32, i32
  }
  func.func @transform_6(%arg0: i32) -> (i32, i32, i32) {
    %c0_i32 = arith.constant 0 : i32
    %c0_i32_0 = arith.constant 0 : i32
    %c0_i32_1 = arith.constant 0 : i32
    return %arg0, %c0_i32, %c0_i32_0 : i32, i32, i32
  }
  func.func @transform_7(%arg0: i32) -> (i32, i32, i32) {
    %c0_i32 = arith.constant 0 : i32
    %c0_i32_0 = arith.constant 0 : i32
    %c0_i32_1 = arith.constant 0 : i32
    return %arg0, %c0_i32, %c0_i32_0 : i32, i32, i32
  }
  func.func @transform_8(%arg0: i32) -> (i32, i32, i32) {
    %c0_i32 = arith.constant 0 : i32
    %c0_i32_0 = arith.constant 0 : i32
    %c0_i32_1 = arith.constant 0 : i32
    return %arg0, %c0_i32, %c0_i32_0 : i32, i32, i32
  }
  func.func @transform_9(%arg0: i32) -> (i32, i32, i32) {
    %c0_i32 = arith.constant 0 : i32
    %c0_i32_0 = arith.constant 0 : i32
    %c0_i32_1 = arith.constant 0 : i32
    return %arg0, %c0_i32, %c0_i32_0 : i32, i32, i32
  }
  func.func @transform_10(%arg0: i32) -> (i32, i32, i32) {
    %c1_i32 = arith.constant 1 : i32
    %0 = arith.subi %c1_i32, %arg0 : i32
    %c0_i32 = arith.constant 0 : i32
    %c0_i32_0 = arith.constant 0 : i32
    %c0_i32_1 = arith.constant 0 : i32
    return %0, %c0_i32, %c0_i32_0 : i32, i32, i32
  }
  func.func @transform_11(%arg0: i32) -> (i32, i32, i32) {
    %c0_i32 = arith.constant 0 : i32
    %c0_i32_0 = arith.constant 0 : i32
    %c0_i32_1 = arith.constant 0 : i32
    return %arg0, %c0_i32, %c0_i32_0 : i32, i32, i32
  }
}

</mosaic_0001>

<bundles_post_ra>
// kernel: tpu_custom_call.1
= control target key start
LH: loop header
LB: loop body
LE: loop exit
PB: predicated region body
PF: predicated region fallthrough
CT: control target
= control target key end

     0   :  { %s5710_s0 = inlined_call_operand.vmem [shape: f32[2,32,128], index: 0, kind: input, shape index: {}]   ;;  %s5711_s1 = inlined_call_operand.vmem [shape: f32[2,32,128], index: 1, kind: input, shape index: {}]   ;;  %s5712_s2 = inlined_call_operand.hbm [shape: f32[32,32], index: 2, kind: input, shape index: {}]   ;;  %s5713_s3 = inlined_call_operand.vmem [shape: f32[128,2], index: 3, kind: input, shape index: {}]   ;;  %s5714_s4 = inlined_call_operand.vmem [shape: f32[2,128], index: 4, kind: input, shape index: {}]   ;;  %s5715_s5 = inlined_call_operand.vmem [shape: f32[2,32,32], index: 5, kind: input, shape index: {}]   ;;  %s5716_s6 = inlined_call_operand.vmem [shape: f32[2,32,32], index: 6, kind: input, shape index: {}]   ;;  %s5717_s7 = inlined_call_operand.hbm [shape: f32[2,32,32], index: 7, kind: input, shape index: {}]   ;;  %s5718_s8 = inlined_call_operand.hbm [shape: f32[2,32,32], index: 8, kind: input, shape index: {}]   ;;  %s5719_s9 = inlined_call_operand.vmem [shape: f32[2,32,3], index: 9, kind: input, shape index: {}]   ;;  %s5720_s10 = inlined_call_operand.vmem [shape: f32[2,32,3], index: 10, kind: input, shape index: {}]   ;;  %s5721_s11 = inlined_call_operand.hbm [shape: f32[2,32,128], index: 11, kind: output, shape index: {}]  }
   0x1   :  { %5733 = sst [smem:[#allocation15_spill]] %s5717_s7 }
   0x2   :  { %16 = vsyncpa [#allocation3], 0 }
   0x3   :  { %17 = vsyncpa [#allocation6], 0 }
   0x4   :  { %19 = vsyncpa [#allocation6 + $0x1], 0 }
   0x5   :  { %20 = vsyncpa [#allocation4], 0 }
   0x6   :  { %22 = vsyncpa [#allocation4 + $0x1], 0  ;;  %s4821_s17 = smov 0   ;;  %s4823_s18 = smov 0  }
   0x7   :  { %s4825_s19 = smov 0   ;;  %s4827_s20 = smov 0  }
   0x8 LB: > { %5734 = sst [smem:[#allocation12_spill]] %s4743_s19  ;;  %s4842_s21 = sadd.s32 1, %s4747_s20   ;;  %s4747_s20 = sphi %s4827_s20, %s5757_s20   ;;  %s4743_s19 = sphi %s4825_s19, %s5759_s19   ;;  %s4739_s18 = sphi %s4823_s18, %s5761_s18   ;;  %s4735_s17 = sphi %s4821_s17, %s5760_s17  }
   0x9   : > { %5735 = sst [smem:[#allocation13_spill]] %s4842_s21  ;;  %s206_s22 = sadd.s32 1, %s4743_s19 }
   0xa   : > { %s203_s23 = ssub.s32 %s4747_s20, %s4842_s21  ;;  %p213_p0 = scmp.ne.s32.totalorder %s4743_s19, %s4739_s18 }
   0xb   : > { %p204_p1 = scmp.eq.s32.totalorder %s203_s23, 0  ;;  %p214_p2 = scmp.eq.s32.totalorder %s4747_s20, 0 }
   0xc   : > { %p4430_p5 = scmp.lt.s32.totalorder %s4747_s20, 2  ;;  %s404_s25 = sand.u32 1, %s4747_s20  }
   0xd   : > { %s4851_s24 = scalar_select %p204_p1, %s4743_s19, %s206_s22  }
   0xe   : > { %p215_p3 = por %p214_p2, %p213_p0  ;;  %s406_s26 = sand.u32 1, %s4743_s19  }
   0xf   : > { %5736 = sst [smem:[#allocation14_spill]] %s4851_s24  ;;  %s4860_s27 = sshll.u32 %s406_s26, 5 }
  0x10   : > { %s3513_s28 = sshll.u32 %s4747_s20, 9  ;;  %s5737_s7 = sld [smem:[#allocation15_spill]] }
  0x11   : > { %s408_s13 = scalar_lea.vmem [#allocation5], %s4860_s27  ;;  %p4871_p6 = pnand %p4430_p5, %p215_p3 }
  0x12   : > { %s415_s14 = sshll.u32 %s408_s13, 4  ;;  %s4877_s16 = scalar_lea.sflag [#allocation6], %s404_s25  ;;  %s4875_s14 = int_to_ptr.vmem [resolvable:$true] %s415_s14 }
  0x13   : > { %p4591_p8 = pneg %p4871_p6 }
  0x16   : > { %s4868_s12 = scalar_lea.hbm %s5737_s7, %s3513_s28  ;;  %s4594_s29 = scalar_lea.hbm %s5737_s7, 1024 }
  0x17   : > { %s4589_s22 = scalar_lea.hbm %s4868_s12, 512  ;;  %p4595_p11 = scmp.lt.u32.totalorder %s4868_s12, %s5737_s7 }
  0x18   : > { %p4590_p7 = scmp.ne.s32.totalorder %s4868_s12, %s4589_s22  ;;  %p4596_p12 = scmp.lt.u32.totalorder %s4594_s29, %s4589_s22 }
  0x19   : > { %p4598_p1 = scmp.lt.u32.totalorder %s4589_s22, %s4868_s12 }
  0x1a   : > { %p4592_p9 = pnand %p4591_p8, %p4590_p7  ;;  %p4597_p13 = por %p4596_p12, %p4595_p11 }
  0x1c   : > { %p4593_p10 = pneg %p4592_p9  ;;  %p4599_p2 = por %p4598_p1, %p4597_p13 }
  0x1e   : > { %p4600_p3 = pnand %p4599_p2, %p4593_p10 }
  0x20   : > { %4603 = shalt.err (!%p4600_p3)
}
  0x21   : > { %s4604_s25 = scalar_lea.vmem %s4875_s14, 512  ;;  %s4749_s23 = smov [#allocation5]  }
  0x22   : > { %p4605_p5 = scmp.ne.s32.totalorder %s4875_s14, %s4604_s25  ;;  %s4609_s26 = sshll.u32 %s4749_s23, 4  ;;  %s4610_s26 = int_to_ptr.vmem [resolvable:$false] %s4609_s26 }
  0x23   : > { %s4611_s30 = scalar_lea.vmem %s4610_s26, 1024  ;;  %p4612_p4 = scmp.lt.s32.totalorder %s4875_s14, %s4610_s26 }
  0x24   : > { %p4607_p7 = pnand %p4605_p5, %p4591_p8  ;;  %p4613_p11 = scmp.lt.s32.totalorder %s4611_s30, %s4604_s25 }
  0x26   : > { %p4608_p9 = pneg %p4607_p7  ;;  %p4614_p12 = por %p4613_p11, %p4612_p4 }
  0x28   : > { %p4615_p13 = pnand %p4614_p12, %p4608_p9 }
  0x2a   : > { %4618 = shalt.err (!%p4615_p13)
}
  0x2b   : > { %s5722_s22 = smov 128   ;;  %s5724_s29 = smov 8  }
  0x2c   : > { %4421 = dma.hbm_to_vmem [thread:$0]  (!%p4871_p6), %s4868_s12, 512, %s4875_s14, %s4877_s16, %s5722_s22, %s5722_s22, %s5724_s29  }
  0x2d   : > { %s429_s13 = scalar_lea.vmem [#allocation7], %s4860_s27  ;;  %s4910_s23 = sadd.s32 4294967295, %s4747_s20  }
  0x2e   : > { %s436_s25 = sshll.u32 %s429_s13, 4  ;;  %s3373_s26 = sadd.s32 4294967294, %s4747_s20   ;;  %s4943_s25 = int_to_ptr.vmem [resolvable:$true] %s436_s25 }
  0x2f   : > { %p219_p4 = scmp.ne.s32.totalorder %s4739_s18, %s4735_s17  ;;  %p5729_p10 = scmp.eq.s32.totalorder %s4910_s23, 0 }
  0x30   : > { %p323_p1 = scmp.eq.s32.totalorder %s4910_s23, 1  ;;  %p329_p2 = scmp.eq.s32.totalorder %s3373_s26, 1 }
  0x31   : > { %p4919_p3 = por %p5729_p10, %p219_p4  ;;  %p3374_p5 = scmp.ge.s32.totalorder %s4747_s20, 1 }
  0x32   : > { %p4927_p7 = por %p323_p1, %p213_p0  ;;  %p4931_p9 = por %p329_p2, %p219_p4 }
  0x33   : > { %s5739_s30 = scalar_select %p4919_p3, 1, 0 }
  0x34   : > { %s5740_s27 = scalar_select %p4927_p7, 1, 0 }
  0x35   : > { %s5741_s12 = scalar_select %p4931_p9, 1, 0 }
  0x36   : > { %p336_p11 = scmp.lt.s32.totalorder %s4747_s20, 3  ;;  %s4941_s26 = scalar_lea.hbm %s5718_s8, %s3513_s28 }
  0x37   : > { %s4752_s29 = smov [#allocation2]   ;;  %s4619_s24 = scalar_lea.hbm %s4941_s26, 512 }
  0x38   : > { %p4945_p0 = pnand %p3374_p5, %p336_p11  ;;  %s4949_s7 = sshll.u32 %s4752_s29, 4  ;;  %s349_s7 = int_to_ptr.vmem [resolvable:$true] %s4949_s7 }
  0x39   : > { %p4620_p13 = scmp.ne.s32.totalorder %s4941_s26, %s4619_s24  ;;  %s4624_s13 = scalar_lea.hbm %s5718_s8, 1024 }
  0x3a   : > { %s5742_s22 = scalar_select %p4945_p0, 1, 0 }
  0x3b   : > { %p4622_p4 = pnand %p4620_p13, %p4591_p8  ;;  %p4625_p2 = scmp.lt.u32.totalorder %s4941_s26, %s5718_s8 }
  0x3c   : > { %p4626_p5 = scmp.lt.u32.totalorder %s4624_s13, %s4619_s24  ;;  %p4628_p10 = scmp.lt.u32.totalorder %s4619_s24, %s4941_s26 }
  0x3d   : > { %p4623_p1 = pneg %p4622_p4 }
  0x3e   : > { %p4627_p11 = por %p4626_p5, %p4625_p2 }
  0x40   : > { %p4629_p9 = por %p4628_p10, %p4627_p11 }
  0x42   : > { %p4630_p7 = pnand %p4629_p9, %p4623_p1 }
  0x44   : > { %4633 = shalt.err (!%p4630_p7)
}
  0x45   : > { %s4634_s29 = scalar_lea.vmem %s4943_s25, 512  ;;  %s4753_s28 = smov [#allocation7]  }
  0x46   : > { %p4635_p13 = scmp.ne.s32.totalorder %s4943_s25, %s4634_s29  ;;  %s4639_s14 = sshll.u32 %s4753_s28, 4  ;;  %s4640_s14 = int_to_ptr.vmem [resolvable:$false] %s4639_s14 }
  0x47   : > { %s4641_s19 = scalar_lea.vmem %s4640_s14, 1024  ;;  %p4642_p3 = scmp.lt.s32.totalorder %s4943_s25, %s4640_s14 }
  0x48   : > { %p4637_p4 = pnand %p4635_p13, %p4591_p8  ;;  %p4643_p2 = scmp.lt.s32.totalorder %s4641_s19, %s4634_s29 }
  0x4a   : > { %p4638_p12 = pneg %p4637_p4  ;;  %p4644_p5 = por %p4643_p2, %p4642_p3 }
  0x4c   : > { %p4645_p10 = pnand %p4644_p5, %p4638_p12 }
  0x4e   : > { %4648 = shalt.err (!%p4645_p10)
}
  0x4f   : > { %s5743_s21 = smov 8   ;;  %s5744_s24 = smov 128  }
  0x50   : > { %4424 = dma.hbm_to_vmem [thread:$0]  (!%p4871_p6), %s4941_s26, 512, %s4943_s25, %s4877_s16, %s5744_s24, %s5744_s24, %s5743_s21  }
  0x51   : > { %p5745_p8 = scmp.eq.s32.totalorder %s4910_s23, 0  ;;  %p5746_p7 = pneg %p4945_p0 }
  0x52   : > { %s4649_s28 = scalar_lea.hbm %s5712_s2, 512 }
  0x53   : > { %p4986_p9 = pnand %p5746_p7, %p5745_p8  ;;  %p4650_p3 = scmp.ne.s32.totalorder %s5712_s2, %s4649_s28 }
  0x54   : > { %p4656_p11 = scmp.lt.u32.totalorder %s4649_s28, %s5712_s2 }
  0x55   : > { %p4651_p12 = pneg %p4986_p9 }
  0x57   : > { %p4652_p6 = pnand %p4651_p12, %p4650_p3 }
  0x59   : > { %p4653_p1 = pneg %p4652_p6 }
  0x5b   : > { %p4658_p13 = pnand %p4656_p11, %p4653_p1 }
  0x5d   : > { %4661 = shalt.err (!%p4658_p13)
}
  0x5e   : > { %s4662_s26 = scalar_lea.vmem %s349_s7, 512  ;;  %p4670_p10 = scmp.lt.s32.totalorder %s349_s7, %s349_s7 }
  0x5f   : > { %p4663_p4 = scmp.ne.s32.totalorder %s349_s7, %s4662_s26  ;;  %p4671_p8 = scmp.lt.s32.totalorder %s4662_s26, %s4662_s26 }
  0x61   : > { %p4665_p2 = pnand %p4663_p4, %p4651_p12  ;;  %p4672_p7 = por %p4671_p8, %p4670_p10 }
  0x63   : > { %p4666_p5 = pneg %p4665_p2 }
  0x65   : > { %p4673_p0 = pnand %p4672_p7, %p4666_p5 }
  0x67   : > { %4676 = shalt.err (!%p4673_p0)
}
  0x68   : > { %4417 = dma.hbm_to_vmem [thread:$0]  (!%p4986_p9), %s5712_s2, 512, %s349_s7, [#allocation3], %s5744_s24, %s5744_s24, %s5743_s21  }
  0x69   : > { %p5748_p3 = scmp.ne.s32.totalorder %s5742_s22, 0 }
  0x6a   : > { %p5749_p12 = scmp.eq.s32.totalorder (!%p5748_p3), %s4910_s23, 0 }
  0x6b   : > { %466 = sbr.rel (%p5748_p3) target bundleno = 2876 (0xb3c), region = 64 }
  0x72   : > { %4722 = dma.done.wait (%p5749_p12), [#allocation3], 512   ;;  %p5750_p6 = pmov %p5749_p12 }
  0x73   : > { %s472_s13 = sand.u32 1, %s4910_s23   ;;  %s474_s28 = sand.u32 1, %s4739_s18  }
  0x74   : > { %4724 = vsyncadd (%p5750_p6), [#allocation3], 4294966784  ;;  %s5019_s14 = sshll.u32 %s474_s28, 5  ;;  %s473_s7 = scalar_lea.sflag [#allocation6], %s472_s13 }
  0x75   : > { %s5022_s21 = scalar_lea.vmem [#allocation5], %s5019_s14  ;;  %p5751_p0 = scmp.ne.s32.totalorder %s5739_s30, 0 }
  0x77   : > { %4726 = dma.done.wait (%p5751_p0), %s473_s7, 1024  }
  0x78   : > { %4728 = vsyncadd (%p5751_p0), %s473_s7, 4294966272  ;;  %p562_p9 = scmp.lt.s32.totalorder %s4910_s23, 1  ;;  %v610_v0 = vld [vmem:[%s5713_s3] sm:$0xff]  ;;  %v611_v1 = vld [vmem:[%s5713_s3 + $0x8] sm:$0xff]  ;;  %vm809_vm0 = vcmask 261120   ;;  %vm1029_vm1 = vcmask 1041408  }
  0x79   : > { %v612_v2 = vld [vmem:[%s5713_s3 + $0x10] sm:$0xff]  ;;  %v5041_v3 = vpack.c.bf16 %v611_v1, %v610_v0  ;;  %v613_v4 = vld [vmem:[%s5713_s3 + $0x18] sm:$0xff]  ;;  %v614_v6 = vld [vmem:[%s5713_s3 + $0x20] sm:$0xff]  ;;  %v4754_v49 = vmov 0   ;;  %v4755_v54 = vmov 1   ;;  %s567_s16 = ssub.s32 1, %s4910_s23 }
  0x7a   : > { %s563_s22 = scalar_select %p562_p9, %s4910_s23, 1  ;;  %v5046_v5 = vpack.c.bf16 %v613_v4, %v612_v2  ;;  %v615_v7 = vld [vmem:[%s5713_s3 + $0x28] sm:$0xff]  ;;  %v616_v10 = vld [vmem:[%s5713_s3 + $0x30] sm:$0xff]  ;;  %v617_v11 = vld [vmem:[%s5713_s3 + $0x38] sm:$0xff]  ;;  %4476 = vset.pattern.permute.xlu1 %v4754_v49  ;;  %4475 = vset.pattern.permute.xlu0 %v4754_v49  ;;  %vm1016_vm2 = vcmask 15360   ;;  %vm2457_vm4 = vcmask 523264  }
  0x7b   : > { %4145 = vmatprep.subr.bf16.mxu0 %v5041_v3  ;;  %4177 = vmatprep.subr.bf16.mxu1 %v5041_v3  ;;  %v5065_v8 = vpack.c.bf16 %v615_v7, %v614_v6  ;;  %v5083_v13 = vpack.c.bf16 %v617_v11, %v616_v10  ;;  %v618_v14 = vld [vmem:[%s5713_s3 + $0x40] sm:$0xff]  ;;  %v619_v15 = vld [vmem:[%s5713_s3 + $0x48] sm:$0xff]  ;;  %v620_v17 = vld [vmem:[%s5713_s3 + $0x50] sm:$0xff]  ;;  %p568_p1 = scmp.lt.s32.totalorder %s567_s16, 1  ;;  %s3521_s13 = sshll.u32 %s4910_s23, 9 }
  0x7c   : > { %s5030_s24 = sshll.u32 %s563_s22, 5  ;;  %4147 = vmatpush3.bf16.msra.mxu0 %v5041_v3  ;;  %4179 = vmatpush3.bf16.msra.mxu1 %v5041_v3  ;;  %v5095_v16 = vpack.c.bf16 %v619_v15, %v618_v14  ;;  %v621_v18 = vld [vmem:[%s5713_s3 + $0x58] sm:$0xff]  ;;  %v622_v20 = vld [vmem:[%s5713_s3 + $0x60] sm:$0xff]  ;;  %v623_v21 = vld [vmem:[%s5713_s3 + $0x68] sm:$0xff]  ;;  %s5663_s22 = scalar_lea.hbm %s5721_s11, %s3521_s13 }
  0x7d   : > { %s5058_s29 = scalar_lea.vmem %s5710_s0, %s5030_s24  ;;  %4149 = vmatprep.subr.bf16.mxu0 %v5046_v5  ;;  %4181 = vmatprep.subr.bf16.mxu1 %v5046_v5  ;;  %v5107_v19 = vpack.c.bf16 %v621_v18, %v620_v17  ;;  %v5119_v22 = vpack.c.bf16 %v623_v21, %v622_v20  ;;  %v624_v23 = vld [vmem:[%s5713_s3 + $0x70] sm:$0xff]  ;;  %v625_v24 = vld [vmem:[%s5713_s3 + $0x78] sm:$0xff]  ;;  %v5158_v32 = vld [vmem:[#allocation2] sm:$0xff]  ;;  %s5201_s19 = scalar_lea.vmem %s5719_s9, %s5030_s24 }
  0x7e   : > { %v5069_v9 = vld [vmem:[%s5058_s29] sm:$0xff]  ;;  %v5131_v25 = vpack.c.bf16 %v625_v24, %v624_v23  ;;  %v5139_v26 = vld [vmem:[%s5058_s29 + $0x8] sm:$0xff]  ;;  %v5142_v27 = vld [vmem:[%s5058_s29 + $0x10] sm:$0xff]  ;;  %s5763_s16 = smov (!%p568_p1, %s567_s16), 1  ;;  %s585_s26 = scalar_lea.vmem %s5716_s6, %s5030_s24 }
  0x7f   : > { %3778 = vmatprep.mubr.f32.mxu0 %v5069_v9  ;;  %v720_v12 = vmul.f32 %v5069_v9, %v5069_v9  ;;  %v721_v28 = vmul.f32 %v5139_v26, %v5139_v26  ;;  %v722_v29 = vmul.f32 %v5142_v27, %v5142_v27  ;;  %v5151_v30 = vld [vmem:[%s5058_s29 + $0x18] sm:$0xff]  ;;  %v5162_v45 = vld [vmem:[#allocation2 + $0x8] sm:$0xff]  ;;  %v5164_v46 = vld [vmem:[#allocation2 + $0x10] sm:$0xff]  ;;  %s5210_s25 = sshll.u32 %s5763_s16, 5  ;;  %s5668_s23 = scalar_lea.sflag [#allocation4], %s474_s28 }
  0x80   : > { %4151 = vmatpush3.bf16.msra.mxu0 %v5046_v5  ;;  %4183 = vmatpush3.bf16.msra.mxu1 %v5046_v5  ;;  %v723_v31 = vmul.f32 %v5151_v30, %v5151_v30  ;;  %v5170_v47 = vld [vmem:[#allocation2 + $0x18] sm:$0xff]  ;;  %v5185_v48 = vld [vmem:[%s5714_s4] sm:$0x3]  ;;  %v629_v50 = vld [vmem:[%s5201_s19 + $0x10] sm:$0xff]  ;;  %s5217_s30 = scalar_lea.vmem %s5711_s1, %s5210_s25  ;;  %s596_s7 = scalar_lea.vmem %s5720_s10, %s5210_s25 }
  0x81   : > { %4153 = vmatprep.subr.bf16.mxu0 %v5065_v8  ;;  %4185 = vmatprep.subr.bf16.mxu1 %v5065_v8  ;;  %v627_v51 = vld [vmem:[%s5201_s19] sm:$0xff]  ;;  %v630_v52 = vld [vmem:[%s5201_s19 + $0x18] sm:$0xff]  ;;  %v628_v53 = vld [vmem:[%s5201_s19 + $0x8] sm:$0xff]  ;;  %p5754_p13 = scmp.ne.s32.totalorder %s5740_s27, 0 }
  0x82   : > { %3816 = vmatprep.mubr.f32.mxu1 %v720_v12  ;;  %1231 = vperm.xlu1 %4476, %v629_v50   ;;  %v5223_v63 = vld [vmem:[%s5217_s30] sm:$0xff]  ;;  %vm4305_vm3 = vmpackc.low %vm809_vm0, %vm809_vm0 }
  0x83   : > { %1221 = vperm.xlu0 %4475, %v627_v51   ;;  %vm5573_vm5 = vmpackc.low %vm2457_vm4, %vm2457_vm4 }
  0x84   : > { %4155 = vmatpush3.bf16.msra.mxu0 %v5065_v8  ;;  %4187 = vmatpush3.bf16.msra.mxu1 %v5065_v8 }
  0x85   : > { %4157 = vmatprep.subr.bf16.mxu0 %v5083_v13  ;;  %4189 = vmatprep.subr.bf16.mxu1 %v5083_v13 }
  0x86   : > { %1236 = vperm.xlu1 %4476, %v630_v52  }
  0x87   : > { %1226 = vperm.xlu0 %4475, %v628_v53  }
  0x88   : > { %4159 = vmatpush3.bf16.msra.mxu0 %v5083_v13  ;;  %4191 = vmatpush3.bf16.msra.mxu1 %v5083_v13 }
  0x89   : > { %4161 = vmatprep.subr.bf16.mxu0 %v5095_v16  ;;  %4193 = vmatprep.subr.bf16.mxu1 %v5095_v16 }
  0x8a   : > { %4478 = vset.pattern.permute.xlu1 %v4755_v54 }
  0x8b   : > { %4477 = vset.pattern.permute.xlu0 %v4755_v54  ;;  %1252 = vperm.xlu1 %4478, %v628_v53  }
  0x8c   : > { %4163 = vmatpush3.bf16.msra.mxu0 %v5095_v16  ;;  %4195 = vmatpush3.bf16.msra.mxu1 %v5095_v16 }
  0x8d   : > { %4165 = vmatprep.subr.bf16.mxu0 %v5107_v19  ;;  %4197 = vmatprep.subr.bf16.mxu1 %v5107_v19 }
  0x8e   : > { %1248 = vperm.xlu0 %4477, %v627_v51  }
  0x8f   : > { %1256 = vperm.xlu1 %4478, %v629_v50  }
  0x90   : > { %4167 = vmatpush3.bf16.msra.mxu0 %v5107_v19  ;;  %4199 = vmatpush3.bf16.msra.mxu1 %v5107_v19 }
  0x91   : > { %4169 = vmatprep.subr.bf16.mxu0 %v5119_v22  ;;  %4201 = vmatprep.subr.bf16.mxu1 %v5119_v22 }
  0x92   : > { %1260 = vperm.xlu0 %4477, %v630_v52  }
  0x93   : > { %4479 = vset.pattern.permute.xlu1 %v4754_v49 }
  0x94   : > { %4171 = vmatpush3.bf16.msra.mxu0 %v5119_v22  ;;  %4203 = vmatpush3.bf16.msra.mxu1 %v5119_v22 }
  0x95   : > { %4173 = vmatprep.subr.bf16.mxu0 %v5131_v25  ;;  %4205 = vmatprep.subr.bf16.mxu1 %v5131_v25 }
  0x96   : > { %4480 = vset.pattern.permute.xlu0 %v4754_v49 }
  0x98   : > { %4175 = vmatpush3.bf16.msra.mxu0 %v5131_v25  ;;  %4207 = vmatpush3.bf16.msra.mxu1 %v5131_v25 }
  0x99   : > { %3858 = vmatprep.subr.msk.mxu1 %vm1029_vm1, %v5185_v48 }
  0x9b   : > { %3779 = vmatmul.mubr.f32.vlgmr.msra.gmra.mrb[0].mxu0 %v5139_v26  ;;  %3817 = vmatmul.mubr.f32.vlgmr.msra.gmra.mrb[0].mxu1 %v721_v28 }
  0x9c   : > { %3781 = vmatprep.mubr.f32.mxu0 %v5142_v27  ;;  %3819 = vmatprep.mubr.f32.mxu1 %v722_v29 }
  0x9d   : > { %3859 = vmatpush3.msk.msra.mxu1 %vm1029_vm1, %v5185_v48 }
  0x9e   : > { %4257 = vmatprep.subr.bf16.mxu1 %v5041_v3 }
  0x9f   : > { %3782 = vmatmul.mubr.f32.gmra.mrb[2].mxu0 %v5151_v30  ;;  %3820 = vmatmul.mubr.f32.gmra.mrb[2].mxu1 %v723_v31 }
  0xa0   : > { %3830 = vmatprep.mubr.msk.f32.mxu0 %vm809_vm0, %v5158_v32 }
 0x16e   : > { %v3780_v33 = vpop.f32.mrb[0].mxu0  ;;  %v3818_v34 = vpop.f32.mrb[0].mxu1 }
 0x16f   : > { %v701_v35 = vpop.f32.mrb[1].mxu0  ;;  %v790_v36 = vpop.f32.mrb[1].mxu1 }
 0x170   : > { %v4208_v37 = vpack.c.bf16 %v3780_v33, %v701_v35  ;;  %v4216_v38 = vpack.c.bf16 %v3818_v34, %v790_v36  ;;  %v1352_v35 = vmul.f32 %v5223_v63, %v5223_v63 }
 0x172   : > { %v3783_v39 = vpop.f32.mrb[2].mxu0  ;;  %4209 = vmatprep.subr.bf16.mxu0 %v4208_v37  ;;  %v3821_v40 = vpop.f32.mrb[2].mxu1 }
 0x173   : > { %v711_v41 = vpop.f32.mrb[3].mxu0  ;;  %4211 = vmatpush3.bf16.msra.mxu0 %v4208_v37  ;;  %v800_v42 = vpop.f32.mrb[3].mxu1 }
 0x174   : > { %v4212_v43 = vpack.c.bf16 %v3783_v39, %v711_v41  ;;  %v4220_v44 = vpack.c.bf16 %v3821_v40, %v800_v42  ;;  %v5262_v39 = vld [vmem:[%s5217_s30 + $0x18] sm:$0xff]  ;;  %v1222_v41 = vpop.permute.xlu0 %1221  ;;  %v1232_v42 = vpop.permute.xlu1 %1231 }
 0x176   : > { %4213 = vmatprep.subr.bf16.mxu0 %v4212_v43 }
 0x177   : > { %4215 = vmatpush3.bf16.msra.mxu0 %v4212_v43 }
 0x178   : > { %4217 = vmatprep.subr.bf16.mxu0 %v4216_v38  ;;  %v1227_v43 = vpop.permute.xlu0 %1226 }
 0x17a   : > { %3831 = vmatmul.mubr.msk.f32.vlgmr.msra.gmra.mrb[4].mxu0 %vm809_vm0, %v5162_v45 }
 0x17b   : > { %4219 = vmatpush3.bf16.msra.mxu0 %v4216_v38  ;;  %3833 = vmatprep.mubr.msk.f32.mxu0 %vm809_vm0, %v5164_v46  ;;  %v5255_v38 = vld [vmem:[%s5217_s30 + $0x10] sm:$0xff] }
 0x17c   : > { %4221 = vmatprep.subr.bf16.mxu0 %v4220_v44 }
 0x17e   : > { %3834 = vmatmul.mubr.msk.f32.gmra.mrb[6].mxu0 %vm809_vm0, %v5170_v47 }
 0x17f   : > { %4223 = vmatpush3.bf16.msra.mxu0 %v4220_v44  ;;  %3844 = vmatprep.mubr.msk.f32.mxu0 %vm809_vm0, %v5158_v32 }
 0x180   : > { %3850 = vmatprep.subr.msk.mxu0 %vm1029_vm1, %v5185_v48 }
 0x182   : > { %3845 = vmatmul.mubr.msk.f32.vlgmr.msra.gmra.mrb[8].mxu0 %vm809_vm0, %v5162_v45 }
 0x183   : > { %3847 = vmatprep.mubr.msk.f32.mxu0 %vm809_vm0, %v5164_v46  ;;  %3851 = vmatpush3.msk.msra.mxu0 %vm1029_vm1, %v5185_v48 }
 0x184   : > { %4225 = vmatprep.subr.bf16.mxu0 %v5041_v3 }
 0x186   : > { %3848 = vmatmul.mubr.msk.f32.gmra.mrb[10].mxu0 %vm809_vm0, %v5170_v47 }
 0x24d   : > { %v3832_v55 = vpop.f32.mrb[4].mxu0 }
 0x24e   : > { %v888_v56 = vpop.f32.mrb[5].mxu0  ;;  %v908_v58 = vmul.f32 0.015625, %v3832_v55  ;;  %v1237_v55 = vpop.permute.xlu1 %1236 }
 0x24f   : > { %v907_v57 = vmul.f32 0.015625, %v888_v56 }
 0x250   : > { %v1001_v1 = vmul.f32 %v908_v58, %v908_v58 }
 0x251   : > { %v3835_v59 = vpop.f32.mrb[6].mxu0  ;;  %3852 = vmatprep.mubr.msk.f32.mxu0 %vm1016_vm2, %v907_v57  ;;  %v1000_v6 = vmul.f32 %v907_v57, %v907_v57 }
 0x252   : > { %v898_v60 = vpop.f32.mrb[7].mxu0  ;;  %3853 = vmatmul.mubr.msk.f32.vlgmr.msra.gmra.mrb[12].mxu0 %vm1016_vm2, %v908_v58  ;;  %v910_v62 = vmul.f32 0.015625, %v3835_v59 }
 0x253   : > { %v909_v61 = vmul.f32 0.015625, %v898_v60  ;;  %4227 = vmatpush3.bf16.msra.mxu0 %v5041_v3 }
 0x254   : > { %4229 = vmatprep.subr.bf16.mxu0 %v5046_v5  ;;  %v1003_v14 = vmul.f32 %v910_v62, %v910_v62 }
 0x255   : > { %v3846_v0 = vpop.f32.mrb[8].mxu0  ;;  %3855 = vmatprep.mubr.msk.f32.mxu0 %vm1016_vm2, %v909_v61  ;;  %v1002_v20 = vmul.f32 %v909_v61, %v909_v61 }
 0x256   : > { %v997_v2 = vmul.f32 0.015625, %v3846_v0  ;;  %v977_v4 = vpop.f32.mrb[9].mxu0  ;;  %3856 = vmatmul.mubr.msk.f32.gmra.mrb[14].mxu0 %vm1016_vm2, %v910_v62 }
 0x257   : > { %v996_v7 = vmul.f32 0.015625, %v977_v4  ;;  %4231 = vmatpush3.bf16.msra.mxu0 %v5046_v5  ;;  %3898 = vmatprep.mubr.f32.mxu0 %v5223_v63 }
 0x258   : > { %v1005_v10 = vsub.f32 %v997_v2, %v1001_v1  ;;  %4233 = vmatprep.subr.bf16.mxu0 %v5065_v8 }
 0x259   : > { %v1004_v11 = vsub.f32 %v996_v7, %v1000_v6  ;;  %v3849_v12 = vpop.f32.mrb[10].mxu0 }
 0x25a   : > { %v1009_v15 = vadd.f32 1e-05, %v1005_v10  ;;  %v999_v17 = vmul.f32 0.015625, %v3849_v12  ;;  %v987_v18 = vpop.f32.mrb[11].mxu0  ;;  %v1253_v10 = vpop.permute.xlu1 %1252 }
 0x25b   : > { %v1008_v21 = vadd.f32 1e-05, %v1004_v11  ;;  %v998_v23 = vmul.f32 0.015625, %v987_v18  ;;  %4235 = vmatpush3.bf16.msra.mxu0 %v5065_v8  ;;  %v1249_v12 = vpop.permute.xlu0 %1248 }
 0x25c   : > { %v1007_v24 = vsub.f32 %v999_v17, %v1003_v14  ;;  %4237 = vmatprep.subr.bf16.mxu0 %v5083_v13 }
 0x25d   : > { %4505 = vrsqrt.f32 %v1008_v21  ;;  %v1006_v28 = vsub.f32 %v998_v23, %v1002_v20  ;;  %v631_v21 = vld [vmem:[%s596_s7] sm:$0xff]  ;;  %v632_v23 = vld [vmem:[%s596_s7 + $0x8] sm:$0xff] }
 0x25e   : > { %4507 = vrsqrt.f32 %v1009_v15  ;;  %v1011_v29 = vadd.f32 1e-05, %v1007_v24  ;;  %1835 = vperm.xlu1 %4479, %v631_v21   ;;  %1840 = vperm.xlu0 %4480, %v632_v23   ;;  %v634_v24 = vld [vmem:[%s596_s7 + $0x18] sm:$0xff] }
 0x25f   : > { %v1010_v31 = vadd.f32 1e-05, %v1006_v28  ;;  %4239 = vmatpush3.bf16.msra.mxu0 %v5083_v13 }
 0x260   : > { %4241 = vmatprep.subr.bf16.mxu0 %v5095_v16 }
 0x261   : > { %4509 = vrsqrt.f32 %v1010_v31 }
 0x262   : > { %4511 = vrsqrt.f32 %v1011_v29  ;;  %1850 = vperm.xlu0 %4480, %v634_v24  }
 0x263   : > { %4243 = vmatpush3.bf16.msra.mxu0 %v5095_v16 }
 0x264   : > { %4245 = vmatprep.subr.bf16.mxu0 %v5107_v19 }
 0x266   : > { %4482 = vset.pattern.permute.xlu0 %v4755_v54 }
 0x267   : > { %v4506_v33 = vpop.eup %4505  ;;  %4247 = vmatpush3.bf16.msra.mxu0 %v5107_v19 }
 0x268   : > { %v4508_v34 = vpop.eup %4507  ;;  %3860 = vmatprep.mubr.msk.f32.mxu1 %vm1016_vm2, %v4506_v33  ;;  %4249 = vmatprep.subr.bf16.mxu0 %v5119_v22 }
 0x269   : > { %3861 = vmatmul.mubr.msk.f32.vlgmr.msra.gmra.mrb[4].mxu1 %vm1016_vm2, %v4508_v34 }
 0x26a   : > { %4259 = vmatpush3.bf16.msra.mxu1 %v5041_v3  ;;  %v5252_v3 = vld [vmem:[%s5217_s30 + $0x8] sm:$0xff]  ;;  %s579_s30 = scalar_lea.vmem %s5715_s5, %s5210_s25  ;;  %s4756_s25 = smov 64  }
 0x26b   : > { %v4510_v36 = vpop.eup %4509  ;;  %4261 = vmatprep.subr.bf16.mxu1 %v5046_v5  ;;  %4251 = vmatpush3.bf16.msra.mxu0 %v5119_v22 }
 0x26c   : > { %v4512_v37 = vpop.eup %4511  ;;  %3863 = vmatprep.mubr.msk.f32.mxu1 %vm1016_vm2, %v4510_v36  ;;  %4253 = vmatprep.subr.bf16.mxu0 %v5131_v25 }
 0x26d   : > { %3864 = vmatmul.mubr.msk.f32.gmra.mrb[6].mxu1 %vm1016_vm2, %v4512_v37 }
 0x26e   : > { %4263 = vmatpush3.bf16.msra.mxu1 %v5046_v5  ;;  %3936 = vmatprep.mubr.f32.mxu1 %v1352_v35  ;;  %v1353_v5 = vmul.f32 %v5252_v3, %v5252_v3 }
 0x26f   : > { %4265 = vmatprep.subr.bf16.mxu1 %v5065_v8  ;;  %4255 = vmatpush3.bf16.msra.mxu0 %v5131_v25 }
 0x272   : > { %4267 = vmatpush3.bf16.msra.mxu1 %v5065_v8  ;;  %3899 = vmatmul.mubr.f32.vlgmr.msra.gmra.mrb[16].mxu0 %v5252_v3  ;;  %v1354_v8 = vmul.f32 %v5255_v38, %v5255_v38 }
 0x273   : > { %4269 = vmatprep.subr.bf16.mxu1 %v5083_v13  ;;  %3901 = vmatprep.mubr.f32.mxu0 %v5255_v38 }
 0x276   : > { %4271 = vmatpush3.bf16.msra.mxu1 %v5083_v13  ;;  %3902 = vmatmul.mubr.f32.gmra.mrb[18].mxu0 %v5262_v39  ;;  %v1355_v13 = vmul.f32 %v5262_v39, %v5262_v39 }
 0x277   : > { %4273 = vmatprep.subr.bf16.mxu1 %v5095_v16  ;;  %3950 = vmatprep.mubr.msk.f32.mxu0 %vm809_vm0, %v5158_v32 }
 0x27a   : > { %4275 = vmatpush3.bf16.msra.mxu1 %v5095_v16 }
 0x27b   : > { %4277 = vmatprep.subr.bf16.mxu1 %v5107_v19 }
 0x27e   : > { %4279 = vmatpush3.bf16.msra.mxu1 %v5107_v19 }
 0x27f   : > { %4281 = vmatprep.subr.bf16.mxu1 %v5119_v22 }
 0x282   : > { %4283 = vmatpush3.bf16.msra.mxu1 %v5119_v22 }
 0x283   : > { %4285 = vmatprep.subr.bf16.mxu1 %v5131_v25 }
 0x286   : > { %4287 = vmatpush3.bf16.msra.mxu1 %v5131_v25 }
 0x289   : > { %3937 = vmatmul.mubr.f32.vlgmr.msra.gmra.mrb[8].mxu1 %v1353_v5 }
 0x28a   : > { %3939 = vmatprep.mubr.f32.mxu1 %v1354_v8 }
 0x28d   : > { %3940 = vmatmul.mubr.f32.gmra.mrb[10].mxu1 %v1355_v13 }
 0x28e   : > { %3964 = vmatprep.mubr.msk.f32.mxu1 %vm809_vm0, %v5158_v32 }
 0x325   : > { %v3854_v16 = vpop.f32.mrb[12].mxu0 }
 0x326   : > { %v1099_v19 = vpop.f32.mrb[13].mxu0  ;;  %v1216_v44 = vsub.f32 %v5139_v26, %v3854_v16 }
 0x327   : > { %v1215_v51 = vsub.f32 %v5069_v9, %v1099_v19 }
 0x329   : > { %v3857_v22 = vpop.f32.mrb[14].mxu0 }
 0x32a   : > { %v1109_v40 = vpop.f32.mrb[15].mxu0  ;;  %v1218_v32 = vsub.f32 %v5151_v30, %v3857_v22 }
 0x32b   : > { %v1217_v60 = vsub.f32 %v5142_v27, %v1109_v40 }
 0x33c   : > { %v3862_v25 = vpop.f32.mrb[4].mxu1 }
 0x33d   : > { %v1240_v49 = vmul.f32 %v3862_v25, %v1227_v43  ;;  %v1196_v50 = vpop.f32.mrb[5].mxu1 }
 0x33e   : > { %v1239_v52 = vmul.f32 %v1222_v41, %v1196_v50 }
 0x33f   : > { %v1244_v53 = vmul.f32 %v1240_v49, %v1216_v44 }
 0x340   : > { %v1243_v56 = vmul.f32 %v1239_v52, %v1215_v51  ;;  %v3865_v57 = vpop.f32.mrb[6].mxu1 }
 0x341   : > { %v1242_v58 = vmul.f32 %v3865_v57, %v1237_v55  ;;  %v1206_v59 = vpop.f32.mrb[7].mxu1  ;;  %v5302_v17 = vadd.f32 %v1253_v10, %v1244_v53  ;;  %v1261_v53 = vpop.permute.xlu0 %1260 }
 0x342   : > { %v1241_v61 = vmul.f32 %v1232_v42, %v1206_v59  ;;  %v5304_v18 = vadd.f32 %v1249_v12, %v1243_v56  ;;  %v1257_v55 = vpop.permute.xlu1 %1256 }
 0x343   : > { %v5288_v62 = vmul.f32 %v1242_v58, %v1218_v32 }
 0x344   : > { %v5290_v0 = vmul.f32 %v1241_v61, %v1217_v60  ;;  %v5310_v20 = vpack.c.bf16 %v5302_v17, %v5304_v18 }
 0x345   : > { %v3900_v26 = vpop.f32.mrb[16].mxu0  ;;  %v5332_v56 = vadd.f32 %v1261_v53, %v5288_v62  ;;  %v1885_v62 = vld [vmem:[%s585_s26] sm:$0xff] }
 0x346   : > { %v1333_v1 = vpop.f32.mrb[17].mxu0  ;;  %v5335_v57 = vadd.f32 %v1257_v55, %v5290_v0  ;;  %v1886_v0 = vld [vmem:[%s585_s26 + $0x8] sm:$0xff] }
 0x347   : > { %v4288_v2 = vpack.c.bf16 %v3900_v26, %v1333_v1  ;;  %v1887_v26 = vld [vmem:[%s585_s26 + $0x10] sm:$0xff]  ;;  %v1888_v1 = vld [vmem:[%s585_s26 + $0x18] sm:$0xff]  ;;  %s4758_s26 = smov [#allocation8]  }
 0x348   : > { %v4320_v59 = vpack.c.bf16 %v5332_v56, %v5335_v57  ;;  %s4681_s24 = sshll.u32 %s4758_s26, 4  ;;  %s4682_s24 = int_to_ptr.vmem [resolvable:$false] %s4681_s24 }
 0x349   : > { %v3903_v9 = vpop.f32.mrb[18].mxu0  ;;  %4289 = vmatprep.subr.bf16.mxu0 %v4288_v2  ;;  %s4683_s15 = scalar_lea.vmem %s4682_s24, 1024 }
 0x34a   : > { %v1343_v4 = vpop.f32.mrb[19].mxu0  ;;  %4291 = vmatpush3.bf16.msra.mxu0 %v4288_v2  ;;  %v1881_v2 = vld [vmem:[%s579_s30] sm:$0xff] }
 0x34b   : > { %v4292_v6 = vpack.c.bf16 %v3903_v9, %v1343_v4  ;;  %v1882_v9 = vld [vmem:[%s579_s30 + $0x8] sm:$0xff]  ;;  %v1883_v4 = vld [vmem:[%s579_s30 + $0x10] sm:$0xff] }
 0x34d   : > { %4293 = vmatprep.subr.bf16.mxu0 %v4292_v6 }
 0x34e   : > { %4295 = vmatpush3.bf16.msra.mxu0 %v4292_v6  ;;  %v4304_v6 = vpack.c.bf16 %v1882_v9, %v1881_v2 }
 0x34f   : > { %3970 = vmatprep.subr.msk.mxu0 %vm1029_vm1, %v5185_v48 }
 0x351   : > { %3951 = vmatmul.mubr.msk.f32.vlgmr.msra.gmra.mrb[20].mxu0 %vm809_vm0, %v5162_v45 }
 0x352   : > { %3953 = vmatprep.mubr.msk.f32.mxu0 %vm809_vm0, %v5164_v46  ;;  %3971 = vmatpush3.msk.msra.mxu0 %vm1029_vm1, %v5185_v48 }
 0x353   : > { %4306 = vmatprep.subr.msk.bf16.mxu0 %vm4305_vm3, %v4304_v6 }
 0x355   : > { %3954 = vmatmul.mubr.msk.f32.gmra.mrb[22].mxu0 %vm809_vm0, %v5170_v47 }
 0x35c   : > { %v3938_v27 = vpop.f32.mrb[8].mxu1 }
 0x35d   : > { %v1422_v30 = vpop.f32.mrb[9].mxu1 }
 0x35e   : > { %v4296_v7 = vpack.c.bf16 %v3938_v27, %v1422_v30  ;;  %v1884_v27 = vld [vmem:[%s579_s30 + $0x18] sm:$0xff] }
 0x35f   : > { %v4310_v30 = vpack.c.bf16 %v1884_v27, %v1883_v4 }
 0x360   : > { %v3941_v11 = vpop.f32.mrb[10].mxu1  ;;  %4297 = vmatprep.subr.bf16.mxu1 %v4296_v7 }
 0x361   : > { %v1432_v14 = vpop.f32.mrb[11].mxu1  ;;  %4299 = vmatpush3.bf16.msra.mxu1 %v4296_v7 }
 0x362   : > { %v4300_v15 = vpack.c.bf16 %v3941_v11, %v1432_v14  ;;  %v1836_v14 = vpop.permute.xlu1 %1835 }
 0x364   : > { %4301 = vmatprep.subr.bf16.mxu1 %v4300_v15 }
 0x365   : > { %4303 = vmatpush3.bf16.msra.mxu1 %v4300_v15  ;;  %v1841_v15 = vpop.permute.xlu0 %1840 }
 0x366   : > { %3978 = vmatprep.subr.msk.mxu1 %vm1029_vm1, %v5185_v48 }
 0x368   : > { %3965 = vmatmul.mubr.msk.f32.vlgmr.msra.gmra.mrb[12].mxu1 %vm809_vm0, %v5162_v45  ;;  %v633_v45 = vld [vmem:[%s596_s7 + $0x10] sm:$0xff] }
 0x369   : > { %3979 = vmatpush3.msk.msra.mxu1 %vm1029_vm1, %v5185_v48  ;;  %3967 = vmatprep.mubr.msk.f32.mxu1 %vm809_vm0, %v5164_v46 }
 0x36a   : > { %4317 = vmatprep.subr.bf16.mxu1 %v5310_v20  ;;  %1845 = vperm.xlu1 %4479, %v633_v45  }
 0x36b   : > { %1870 = vperm.xlu0 %4482, %v633_v45  }
 0x36c   : > { %3968 = vmatmul.mubr.msk.f32.gmra.mrb[14].mxu1 %vm809_vm0, %v5170_v47 }
 0x36e   : > { %4481 = vset.pattern.permute.xlu1 %v4755_v54 }
 0x36f   : > { %1862 = vperm.xlu1 %4481, %v631_v21  }
 0x373   : > { %1866 = vperm.xlu1 %4481, %v632_v23  }
 0x377   : > { %1874 = vperm.xlu1 %4481, %v634_v24  }
 0x424   : > { %v3952_v46 = vpop.f32.mrb[20].mxu0 }
 0x425   : > { %v1527_v47 = vmul.f32 0.015625, %v3952_v46  ;;  %v1507_v48 = vpop.f32.mrb[21].mxu0 }
 0x426   : > { %v1526_v28 = vmul.f32 0.015625, %v1507_v48  ;;  %v1851_v48 = vpop.permute.xlu0 %1850 }
 0x427   : > { %v1620_v54 = vmul.f32 %v1527_v47, %v1527_v47 }
 0x428   : > { %3972 = vmatprep.mubr.msk.f32.mxu0 %vm1016_vm2, %v1526_v28  ;;  %v3955_v29 = vpop.f32.mrb[22].mxu0  ;;  %v1619_v35 = vmul.f32 %v1526_v28, %v1526_v28 }
 0x429   : > { %3973 = vmatmul.mubr.msk.f32.vlgmr.msra.gmra.mrb[24].mxu0 %vm1016_vm2, %v1527_v47  ;;  %v1529_v31 = vmul.f32 0.015625, %v3955_v29  ;;  %v1517_v33 = vpop.f32.mrb[23].mxu0 }
 0x42a   : > { %v1528_v34 = vmul.f32 0.015625, %v1517_v33  ;;  %4309 = vmatpush3.bf16.xpose.msk.msra.mxu0 %vm4305_vm3, %v4304_v6 }
 0x42b   : > { %v1622_v16 = vmul.f32 %v1529_v31, %v1529_v31  ;;  %4312 = vmatprep.subr.msk.bf16.mxu0 %vm4305_vm3, %v4310_v30 }
 0x42c   : > { %3975 = vmatprep.mubr.msk.f32.mxu0 %vm1016_vm2, %v1528_v34  ;;  %v1621_v22 = vmul.f32 %v1528_v34, %v1528_v34 }
 0x42d   : > { %3976 = vmatmul.mubr.msk.f32.gmra.mrb[26].mxu0 %vm1016_vm2, %v1529_v31 }
 0x432   : > { %4315 = vmatpush3.bf16.xpose.msk.msra.mxu0 %vm4305_vm3, %v4310_v30 }
 0x43b   : > { %v3966_v36 = vpop.f32.mrb[12].mxu1 }
 0x43c   : > { %v1616_v37 = vmul.f32 0.015625, %v3966_v36  ;;  %v1596_v5 = vpop.f32.mrb[13].mxu1 }
 0x43d   : > { %v1615_v8 = vmul.f32 0.015625, %v1596_v5 }
 0x43e   : > { %v1624_v13 = vsub.f32 %v1616_v37, %v1620_v54 }
 0x43f   : > { %v1623_v19 = vsub.f32 %v1615_v8, %v1619_v35  ;;  %v3969_v40 = vpop.f32.mrb[14].mxu1 }
 0x440   : > { %v1628_v41 = vadd.f32 1e-05, %v1624_v13  ;;  %v1618_v42 = vmul.f32 0.015625, %v3969_v40  ;;  %v1606_v43 = vpop.f32.mrb[15].mxu1 }
 0x441   : > { %v1627_v25 = vadd.f32 1e-05, %v1623_v19  ;;  %v1617_v44 = vmul.f32 0.015625, %v1606_v43 }
 0x442   : > { %v1626_v49 = vsub.f32 %v1618_v42, %v1622_v16  ;;  %v1871_v16 = vpop.permute.xlu0 %1870  ;;  %v1891_v42 = vld [vmem:[%s5022_s21 + $0x10] sm:$0xff] }
 0x443   : > { %4513 = vrsqrt.f32 %v1627_v25  ;;  %v1625_v50 = vsub.f32 %v1617_v44, %v1621_v22 }
 0x444   : > { %4515 = vrsqrt.f32 %v1628_v41  ;;  %v1630_v51 = vadd.f32 1e-05, %v1626_v49  ;;  %v1890_v41 = vld [vmem:[%s5022_s21 + $0x8] sm:$0xff]  ;;  %v1892_v49 = vld [vmem:[%s5022_s21 + $0x18] sm:$0xff] }
 0x445   : > { %v1629_v52 = vadd.f32 1e-05, %v1625_v50 }
 0x446   : > { %4517 = vrsqrt.f32 %v1630_v51 }
 0x447   : > { %4519 = vrsqrt.f32 %v1629_v52 }
 0x44d   : > { %v4514_v32 = vpop.eup %4513 }
 0x44e   : > { %v4516_v58 = vpop.eup %4515  ;;  %3980 = vmatprep.mubr.msk.f32.mxu1 %vm1016_vm2, %v4514_v32 }
 0x44f   : > { %3981 = vmatmul.mubr.msk.f32.vlgmr.msra.gmra.mrb[16].mxu1 %vm1016_vm2, %v4516_v58 }
 0x450   : > { %v4518_v60 = vpop.eup %4517  ;;  %4319 = vmatpush3.bf16.msra.mxu1 %v5310_v20 }
 0x451   : > { %v4520_v61 = vpop.eup %4519  ;;  %4321 = vmatprep.subr.bf16.mxu1 %v4320_v59 }
 0x452   : > { %3983 = vmatprep.mubr.msk.f32.mxu1 %vm1016_vm2, %v4520_v61 }
 0x453   : > { %3984 = vmatmul.mubr.msk.f32.gmra.mrb[18].mxu1 %vm1016_vm2, %v4518_v60 }
 0x454   : > { %4323 = vmatpush3.bf16.msra.mxu1 %v4320_v59  ;;  %4026 = vmatprep.mubr.msk.f32.mxu1 %vm809_vm0, %v1885_v62 }
 0x455   : > { %4325 = vmatprep.subr.bf16.mxu1 %v5310_v20 }
 0x457   : > { %4027 = vmatmul.mubr.msk.f32.vlgmr.msra.gmra.mrb[20].mxu1 %vm809_vm0, %v1886_v0 }
 0x458   : > { %4327 = vmatpush3.bf16.msra.mxu1 %v5310_v20  ;;  %4029 = vmatprep.mubr.msk.f32.mxu1 %vm809_vm0, %v1887_v26  ;;  %v1846_v20 = vpop.permute.xlu1 %1845 }
 0x459   : > { %4329 = vmatprep.subr.bf16.mxu1 %v4320_v59 }
 0x45b   : > { %4030 = vmatmul.mubr.msk.f32.gmra.mrb[22].mxu1 %vm809_vm0, %v1888_v1 }
 0x45c   : > { %4331 = vmatpush3.bf16.msra.mxu1 %v4320_v59  ;;  %v1863_v28 = vpop.permute.xlu1 %1862 }
 0x460   : > { %v1867_v8 = vpop.permute.xlu1 %1866 }
 0x4fc   : > { %v3974_v7 = vpop.f32.mrb[24].mxu0 }
 0x4fd   : > { %v1713_v10 = vpop.f32.mrb[25].mxu0  ;;  %v1830_v23 = vsub.f32 %v5252_v3, %v3974_v7 }
 0x4fe   : > { %v1829_v46 = vsub.f32 %v5223_v63, %v1713_v10 }
 0x500   : > { %v3977_v11 = vpop.f32.mrb[26].mxu0 }
 0x501   : > { %v1723_v12 = vpop.f32.mrb[27].mxu0  ;;  %v1832_v34 = vsub.f32 %v5262_v39, %v3977_v11  ;;  %v1875_v39 = vpop.permute.xlu1 %1874 }
 0x502   : > { %v1831_v36 = vsub.f32 %v5255_v38, %v1723_v12  ;;  %v1889_v38 = vld [vmem:[%s5022_s21] sm:$0xff]  ;;  %s5633_s21 = scalar_lea.vmem [#allocation7], %s5019_s14 }
 0x503   : > { %4040 = vmatprep.mubr.msk.f32.mxu1 %vm809_vm0, %v1889_v38 }
 0x504   : > { %4041 = vmatmul.mubr.msk.f32.vlgmr.msra.gmra.mrb[24].mxu1 %vm809_vm0, %v1890_v41 }
 0x505   : > { %4043 = vmatprep.mubr.msk.f32.mxu1 %vm809_vm0, %v1891_v42 }
 0x508   : > { %4044 = vmatmul.mubr.msk.f32.gmra.mrb[26].mxu1 %vm809_vm0, %v1892_v49 }
 0x522   : > { %v3982_v21 = vpop.f32.mrb[16].mxu1 }
 0x523   : > { %v1854_v45 = vmul.f32 %v3982_v21, %v1841_v15  ;;  %v1810_v24 = vpop.f32.mrb[17].mxu1 }
 0x524   : > { %v1853_v47 = vmul.f32 %v1836_v14, %v1810_v24 }
 0x525   : > { %v1858_v29 = vmul.f32 %v1854_v45, %v1830_v23 }
 0x526   : > { %v1857_v31 = vmul.f32 %v1853_v47, %v1829_v46  ;;  %v3985_v33 = vpop.f32.mrb[18].mxu1 }
 0x527   : > { %v1856_v54 = vmul.f32 %v3985_v33, %v1851_v48  ;;  %v1820_v35 = vpop.f32.mrb[19].mxu1  ;;  %v1878_v13 = vadd.f32 %v1867_v8, %v1858_v29 }
 0x528   : > { %v1855_v37 = vmul.f32 %v1846_v20, %v1820_v35  ;;  %v1877_v3 = vadd.f32 %v1863_v28, %v1857_v31 }
 0x529   : > { %v1860_v5 = vmul.f32 %v1856_v54, %v1832_v34 }
 0x52a   : > { %1897 = vxpose.xlu1.b32.start [1/4] (short) %v1877_v3, 128  ;;  %v1859_v63 = vmul.f32 %v1855_v37, %v1831_v36  ;;  %v4028_v40 = vpop.f32.mrb[20].mxu1 }
 0x52b   : > { %v1880_v22 = vadd.f32 %v1875_v39, %v1860_v5  ;;  %v2212_v43 = vpop.f32.mrb[21].mxu1 }
 0x52c   : > { %v1879_v19 = vadd.f32 %v1871_v16, %v1859_v63  ;;  %v4483_v25 = vpack.i.bf16 %v4028_v40, %v2212_v43  ;;  %v4332_v44 = vpack.c.bf16 %v4028_v40, %v2212_v43 }
 0x52e   : > { %1898 = vxpose.xlu1.b32.cont [2/4] (short) %v1878_v13, 128  ;;  %4484 = vrot.lane.b32.xlu0 %v4483_v25, %s4756_s25  ;;  %v4031_v50 = vpop.f32.mrb[22].mxu1 }
 0x52f   : > { %4333 = vmatprep.subr.bf16.mxu1 %v4332_v44  ;;  %v2222_v51 = vpop.f32.mrb[23].mxu1 }
 0x530   : > { %4335 = vmatpush3.bf16.msra.mxu1 %v4332_v44  ;;  %v4488_v52 = vpack.i.bf16 %v4031_v50, %v2222_v51  ;;  %v4336_v53 = vpack.c.bf16 %v4031_v50, %v2222_v51 }
 0x532   : > { %1899 = vxpose.xlu1.b32.cont [3/4] (short) %v1879_v19, 128  ;;  %4489 = vrot.lane.b32.xlu0 %v4488_v52, %s4756_s25 }
 0x533   : > { %4337 = vmatprep.subr.bf16.mxu1 %v4336_v53 }
 0x534   : > { %4339 = vmatpush3.bf16.msra.mxu1 %v4336_v53 }
 0x536   : > { %1900 = vxpose.xlu1.b32.end [4/4] (short) %v1880_v22, 128 }
 0x5a0   : > { %v4485_v7 = vpop.permute.xlu0 %4484 }
 0x5a1   : > { %v4487_v10 = vunpack.i.h.bf16 %v4485_v7  ;;  %v4486_v11 = vunpack.i.l.bf16 %v4485_v7 }
 0x5a3   : > { %v4364_v12 = vpack.c.bf16 %v4487_v10, %v4486_v11 }
 0x5a4   : > { %v4490_v23 = vpop.permute.xlu0 %4489 }
 0x5a5   : > { %4365 = vmatprep.subr.bf16.mxu1 %v4364_v12  ;;  %v4492_v45 = vunpack.i.h.bf16 %v4490_v23  ;;  %v4491_v24 = vunpack.i.l.bf16 %v4490_v23 }
 0x5a7   : > { %v4368_v48 = vpack.c.bf16 %v4492_v45, %v4491_v24 }
 0x5aa   : > { %v1913_v55 = vpop.trf.xlu1 }
 0x5ab   : > { %3994 = vmatprep.mubr.msk.f32.mxu0 %vm809_vm0, %v1913_v55 }
 0x5ae   : > { %v1914_v32 = vpop.trf.xlu1 }
 0x5af   : > { %3995 = vmatmul.mubr.msk.f32.vlgmr.msra.gmra.mrb[28].mxu0 %vm809_vm0, %v1914_v32 }
 0x5b2   : > { %v1915_v58 = vpop.trf.xlu1 }
 0x5b3   : > { %3997 = vmatprep.mubr.msk.f32.mxu0 %vm809_vm0, %v1915_v58 }
 0x5b6   : > { %v1916_v59 = vpop.trf.xlu1 }
 0x5b7   : > { %3998 = vmatmul.mubr.msk.f32.gmra.mrb[30].mxu0 %vm809_vm0, %v1916_v59 }
 0x5ba   : > { %v1917_v60 = vpop.trf.xlu1 }
 0x5bb   : > { %4000 = vmatprep.mubr.msk.f32.mxu0 %vm809_vm0, %v1917_v60 }
 0x5be   : > { %v1918_v61 = vpop.trf.xlu1 }
 0x5bf   : > { %4001 = vmatmul.mubr.msk.f32.gmra.mrb[32].mxu0 %vm809_vm0, %v1918_v61 }
 0x5c2   : > { %v1919_v62 = vpop.trf.xlu1 }
 0x5c3   : > { %4003 = vmatprep.mubr.msk.f32.mxu0 %vm809_vm0, %v1919_v62 }
 0x5c6   : > { %v1920_v0 = vpop.trf.xlu1 }
 0x5c7   : > { %4004 = vmatmul.mubr.msk.f32.gmra.mrb[34].mxu0 %vm809_vm0, %v1920_v0 }
 0x5ca   : > { %v1921_v26 = vpop.trf.xlu1 }
 0x5cb   : > { %4006 = vmatprep.mubr.msk.f32.mxu0 %vm809_vm0, %v1921_v26 }
 0x5ce   : > { %v1922_v1 = vpop.trf.xlu1 }
 0x5cf   : > { %4007 = vmatmul.mubr.msk.f32.gmra.mrb[36].mxu0 %vm809_vm0, %v1922_v1 }
 0x5d2   : > { %v1923_v2 = vpop.trf.xlu1 }
 0x5d3   : > { %4009 = vmatprep.mubr.msk.f32.mxu0 %vm809_vm0, %v1923_v2 }
 0x5d6   : > { %v1924_v9 = vpop.trf.xlu1 }
 0x5d7   : > { %4010 = vmatmul.mubr.msk.f32.gmra.mrb[38].mxu0 %vm809_vm0, %v1924_v9  ;;  %v5390_v14 = vpop.f32.mrb[24].mxu1 }
 0x5d8   : > { %v5392_v15 = vpop.f32.mrb[25].mxu1 }
 0x5da   : > { %v1925_v4 = vpop.trf.xlu1 }
 0x5db   : > { %4012 = vmatprep.mubr.msk.f32.mxu0 %vm809_vm0, %v1925_v4  ;;  %v5394_v20 = vpop.f32.mrb[26].mxu1 }
 0x5dc   : > { %v5396_v21 = vpop.f32.mrb[27].mxu1 }
 0x5de   : > { %v1926_v6 = vpop.trf.xlu1 }
 0x5df   : > { %4013 = vmatmul.mubr.msk.f32.gmra.mrb[40].mxu0 %vm809_vm0, %v1926_v6 }
 0x5e2   : > { %v1927_v27 = vpop.trf.xlu1 }
 0x5e3   : > { %4015 = vmatprep.mubr.msk.f32.mxu0 %vm809_vm0, %v1927_v27 }
 0x5e6   : > { %v1928_v30 = vpop.trf.xlu1 }
 0x5e7   : > { %4016 = vmatmul.mubr.msk.f32.gmra.mrb[42].mxu0 %vm809_vm0, %v1928_v30 }
 0x5e8   : > { %4082 = vmatprep.mubr.msk.f32.mxu0 %vm2457_vm4, %v5392_v15 }
 0x682   : > { %v3996_v46 = vpop.f32.mrb[28].mxu0 }
 0x683   : > { %v2055_v47 = vpop.f32.mrb[29].mxu0 }
 0x684   : > { %4054 = vmatprep.mubr.msk.f32.mxu1 %vm809_vm0, %v2055_v47 }
 0x685   : > { %4055 = vmatmul.mubr.msk.f32.vlgmr.msra.gmra.mrb[28].mxu1 %vm809_vm0, %v3996_v46 }
 0x686   : > { %4367 = vmatpush3.bf16.msra.mxu1 %v4364_v12 }
 0x687   : > { %4369 = vmatprep.subr.bf16.mxu1 %v4368_v48 }
 0x68a   : > { %v3999_v28 = vpop.f32.mrb[30].mxu0  ;;  %4371 = vmatpush3.bf16.msra.mxu1 %v4368_v48 }
 0x68b   : > { %v2065_v29 = vpop.f32.mrb[31].mxu0 }
 0x68c   : > { %4057 = vmatprep.mubr.msk.f32.mxu1 %vm809_vm0, %v2065_v29 }
 0x68d   : > { %4058 = vmatmul.mubr.msk.f32.gmra.mrb[30].mxu1 %vm809_vm0, %v3999_v28 }
 0x692   : > { %v4002_v31 = vpop.f32.mrb[32].mxu0 }
 0x693   : > { %v2075_v33 = vpop.f32.mrb[33].mxu0 }
 0x694   : > { %4060 = vmatprep.mubr.msk.f32.mxu1 %vm809_vm0, %v2075_v33 }
 0x695   : > { %4061 = vmatmul.mubr.msk.f32.gmra.mrb[32].mxu1 %vm809_vm0, %v4002_v31 }
 0x69a   : > { %v4005_v34 = vpop.f32.mrb[34].mxu0 }
 0x69b   : > { %v2085_v54 = vpop.f32.mrb[35].mxu0 }
 0x69c   : > { %4063 = vmatprep.mubr.msk.f32.mxu1 %vm809_vm0, %v2085_v54 }
 0x69d   : > { %4064 = vmatmul.mubr.msk.f32.gmra.mrb[34].mxu1 %vm809_vm0, %v4005_v34 }
 0x6a2   : > { %v4008_v35 = vpop.f32.mrb[36].mxu0 }
 0x6a3   : > { %v2095_v36 = vpop.f32.mrb[37].mxu0 }
 0x6a4   : > { %4096 = vmatprep.mubr.msk.f32.mxu1 %vm809_vm0, %v2095_v36 }
 0x6a5   : > { %4097 = vmatmul.mubr.msk.f32.vlgmr.msra.gmra.mrb[36].mxu1 %vm809_vm0, %v4008_v35 }
 0x6aa   : > { %v4011_v37 = vpop.f32.mrb[38].mxu0 }
 0x6ab   : > { %v2105_v3 = vpop.f32.mrb[39].mxu0 }
 0x6ac   : > { %4099 = vmatprep.mubr.msk.f32.mxu1 %vm809_vm0, %v2105_v3 }
 0x6ad   : > { %4100 = vmatmul.mubr.msk.f32.gmra.mrb[38].mxu1 %vm809_vm0, %v4011_v37 }
 0x6b2   : > { %v4014_v5 = vpop.f32.mrb[40].mxu0 }
 0x6b3   : > { %v2115_v63 = vpop.f32.mrb[41].mxu0 }
 0x6b4   : > { %4102 = vmatprep.mubr.msk.f32.mxu1 %vm809_vm0, %v2115_v63 }
 0x6b5   : > { %4103 = vmatmul.mubr.msk.f32.gmra.mrb[40].mxu1 %vm809_vm0, %v4014_v5 }
 0x6ba   : > { %v4017_v8 = vpop.f32.mrb[42].mxu0 }
 0x6bb   : > { %v2125_v13 = vpop.f32.mrb[43].mxu0 }
 0x6bc   : > { %4105 = vmatprep.mubr.msk.f32.mxu1 %vm809_vm0, %v2125_v13 }
 0x6bd   : > { %4106 = vmatmul.mubr.msk.f32.gmra.mrb[42].mxu1 %vm809_vm0, %v4017_v8 }
 0x758   : > { %v4056_v16 = vpop.f32.mrb[28].mxu1 }
 0x759   : > { %v2418_v19 = vpop.f32.mrb[29].mxu1  ;;  %v2461_v62 = vsel %vm2457_vm4, %v4056_v16, -inf }
 0x75a   : > { %v2458_v60 = vsel %vm2457_vm4, %v2418_v19, -inf }
 0x760   : > { %v5416_v39 = vpop.f32.mrb[30].mxu1 }
 0x761   : > { %v5418_v22 = vpop.f32.mrb[31].mxu1  ;;  %v2467_v1 = vsel %vm2457_vm4, %v5416_v39, -inf }
 0x762   : > { %v2464_v26 = vsel %vm2457_vm4, %v5418_v22, -inf }
 0x768   : > { %v5420_v40 = vpop.f32.mrb[32].mxu1 }
 0x769   : > { %v5422_v38 = vpop.f32.mrb[33].mxu1  ;;  %v2473_v9 = vsel %vm2457_vm4, %v5420_v40, -inf }
 0x76a   : > { %v2470_v2 = vsel %vm2457_vm4, %v5422_v38, -inf }
 0x770   : > { %v5424_v41 = vpop.f32.mrb[34].mxu1 }
 0x771   : > { %v5426_v42 = vpop.f32.mrb[35].mxu1  ;;  %v2479_v6 = vsel %vm2457_vm4, %v5424_v41, -inf }
 0x772   : > { %v2476_v4 = vsel %vm2457_vm4, %v5426_v42, -inf }
 0x778   : > { %v4098_v43 = vpop.f32.mrb[36].mxu1 }
 0x779   : > { %v5428_v25 = vpop.f32.mrb[37].mxu1  ;;  %v2823_v44 = vsel %vm2457_vm4, %v4098_v43, -inf }
 0x77a   : > { %2824 = vmax.xlane.f32.xlu0 %v2823_v44  ;;  %v2820_v49 = vsel %vm2457_vm4, %v5428_v25, -inf }
 0x77e   : > { %2821 = vmax.xlane.f32.xlu0 %v2820_v49 }
 0x780   : > { %v5433_v50 = vpop.f32.mrb[38].mxu1 }
 0x781   : > { %v5435_v51 = vpop.f32.mrb[39].mxu1  ;;  %v2829_v52 = vsel %vm2457_vm4, %v5433_v50, -inf }
 0x782   : > { %2830 = vmax.xlane.f32.xlu0 %v2829_v52  ;;  %v2826_v53 = vsel %vm2457_vm4, %v5435_v51, -inf }
 0x786   : > { %2827 = vmax.xlane.f32.xlu0 %v2826_v53 }
 0x788   : > { %v5441_v55 = vpop.f32.mrb[40].mxu1 }
 0x789   : > { %v5443_v32 = vpop.f32.mrb[41].mxu1  ;;  %v2835_v58 = vsel %vm2457_vm4, %v5441_v55, -inf }
 0x78a   : > { %2836 = vmax.xlane.f32.xlu0 %v2835_v58  ;;  %v2832_v59 = vsel %vm2457_vm4, %v5443_v32, -inf }
 0x78b   : > { %2833 = vmax.xlane.f32.xlu1 %v2832_v59 }
 0x78e   : > { %2459 = vmax.xlane.f32.xlu0 %v2458_v60 }
 0x790   : > { %v5450_v61 = vpop.f32.mrb[42].mxu1 }
 0x791   : > { %v5453_v0 = vpop.f32.mrb[43].mxu1  ;;  %v2841_v27 = vsel %vm2457_vm4, %v5450_v61, -inf }
 0x792   : > { %2462 = vmax.xlane.f32.xlu0 %v2461_v62  ;;  %v2838_v30 = vsel %vm2457_vm4, %v5453_v0, -inf }
 0x796   : > { %2465 = vmax.xlane.f32.xlu0 %v2464_v26 }
 0x79a   : > { %2468 = vmax.xlane.f32.xlu0 %v2467_v1 }
 0x79c   : > { %2918 = vrot.lane.b32.xlu1 %v5390_v14, %s4756_s25 }
 0x79e   : > { %2471 = vmax.xlane.f32.xlu0 %v2470_v2 }
 0x7a0   : > { %2920 = vrot.lane.b32.xlu1 %v5396_v21, %s4756_s25 }
 0x7a2   : > { %2474 = vmax.xlane.f32.xlu0 %v2473_v9 }
 0x7a6   : > { %2477 = vmax.xlane.f32.xlu0 %v2476_v4 }
 0x7aa   : > { %2480 = vmax.xlane.f32.xlu0 %v2479_v6 }
 0x7ae   : > { %2842 = vmax.xlane.f32.xlu0 %v2841_v27 }
 0x7b2   : > { %2839 = vmax.xlane.f32.xlu0 %v2838_v30 }
 0x7c8   : > { %2916 = vrot.lane.b32.xlu0 %v5392_v15, %s4756_s25 }
 0x807   : > { %v2825_v7 = vpop.xlane.xlu0 %2824 }
 0x808   : > { %v2845_v48 = vsub.f32 %v4098_v43, %v2825_v7 }
 0x80a   : > { %v2854_v34 = vmul.f32 1.442695, %v2845_v48 }
 0x80b   : > { %v2822_v10 = vpop.xlane.xlu0 %2821 }
 0x80c   : > { %v2844_v54 = vsub.f32 %v5428_v25, %v2822_v10 }
 0x80e   : > { %v2852_v37 = vmul.f32 1.442695, %v2844_v54 }
 0x80f   : > { %v2831_v11 = vpop.xlane.xlu0 %2830 }
 0x810   : > { %v2847_v3 = vsub.f32 %v5433_v50, %v2831_v11 }
 0x812   : > { %v2858_v13 = vmul.f32 1.442695, %v2847_v3 }
 0x813   : > { %v2828_v12 = vpop.xlane.xlu0 %2827 }
 0x817   : > { %v2837_v23 = vpop.xlane.xlu0 %2836 }
 0x818   : > { %v2849_v50 = vsub.f32 %v5441_v55, %v2837_v23  ;;  %v2834_v53 = vpop.xlane.xlu1 %2833 }
 0x819   : > { %v2848_v55 = vsub.f32 %v5443_v32, %v2834_v53 }
 0x81a   : > { %v2862_v62 = vmul.f32 1.442695, %v2849_v50 }
 0x81b   : > { %v2460_v45 = vpop.xlane.xlu0 %2459  ;;  %v2860_v4 = vmul.f32 1.442695, %v2848_v55 }
 0x81c   : > { %v2482_v24 = vsub.f32 %v2418_v19, %v2460_v45 }
 0x81e   : > { %v2490_v28 = vmul.f32 1.442695, %v2482_v24 }
 0x81f   : > { %v2463_v46 = vpop.xlane.xlu0 %2462 }
 0x820   : > { %v2483_v47 = vsub.f32 %v4056_v16, %v2463_v46  ;;  %v2846_v16 = vsub.f32 %v5435_v51, %v2828_v12 }
 0x822   : > { %v2492_v29 = vmul.f32 1.442695, %v2483_v47  ;;  %v2856_v49 = vmul.f32 1.442695, %v2846_v16 }
 0x823   : > { %v2466_v31 = vpop.xlane.xlu0 %2465 }
 0x824   : > { %4521 = vpow2.f32 %v2492_v29  ;;  %v2484_v33 = vsub.f32 %v5418_v22, %v2466_v31 }
 0x825   : > { %4523 = vpow2.f32 %v2490_v28 }
 0x826   : > { %v2494_v15 = vmul.f32 1.442695, %v2484_v33 }
 0x827   : > { %v5479_v35 = vpop.xlane.xlu0 %2468 }
 0x828   : > { %4525 = vpow2.f32 %v2494_v15  ;;  %v2485_v36 = vsub.f32 %v5416_v39, %v5479_v35 }
 0x829   : > { %4527 = vpow2.f32 %v2854_v34 }
 0x82a   : > { %4529 = vpow2.f32 %v2852_v37  ;;  %v2496_v37 = vmul.f32 1.442695, %v2485_v36 }
 0x82b   : > { %v5484_v5 = vpop.xlane.xlu0 %2471  ;;  %4531 = vpow2.f32 %v2858_v13 }
 0x82c   : > { %v2486_v63 = vsub.f32 %v5422_v38, %v5484_v5 }
 0x82e   : > { %v5488_v8 = vpop.eup %4521  ;;  %v2498_v3 = vmul.f32 1.442695, %v2486_v63 }
 0x82f   : > { %v2475_v19 = vpop.xlane.xlu0 %2474  ;;  %v2509_v22 = vsel %vm2457_vm4, %v5488_v8, 0.0  ;;  %v5493_v43 = vpop.eup %4523 }
 0x830   : > { %v2487_v25 = vsub.f32 %v5420_v40, %v2475_v19  ;;  %2510 = vadd.xlane.f32.xlu0 %v2509_v22  ;;  %v2506_v59 = vsel %vm2457_vm4, %v5493_v43, 0.0 }
 0x832   : > { %v5496_v44 = vpop.eup %4525  ;;  %v2500_v52 = vmul.f32 1.442695, %v2487_v25 }
 0x833   : > { %v2478_v58 = vpop.xlane.xlu0 %2477  ;;  %v2512_v51 = vsel %vm2457_vm4, %v5496_v44, 0.0  ;;  %v5503_v60 = vpop.eup %4527 }
 0x834   : > { %4533 = vpow2.f32 %v2500_v52  ;;  %v2488_v40 = vsub.f32 %v5426_v42, %v2478_v58  ;;  %2513 = vadd.xlane.f32.xlu1 %v2512_v51  ;;  %2507 = vadd.xlane.f32.xlu0 %v2506_v59  ;;  %v2871_v1 = vsel %vm2457_vm4, %v5503_v60, 0.0  ;;  %v5509_v2 = vpop.eup %4529  ;;  %v4586_v51 = vld [vmem:[%s5201_s19] sm:$0xff] }
 0x835   : > { %4535 = vpow2.f32 %v2856_v49  ;;  %v2868_v42 = vsel %vm2457_vm4, %v5509_v2, 0.0  ;;  %v5514_v30 = vpop.eup %4531 }
 0x836   : > { %4537 = vpow2.f32 %v2862_v62  ;;  %v2877_v12 = vsel %vm2457_vm4, %v5514_v30, 0.0  ;;  %v2502_v13 = vmul.f32 1.442695, %v2488_v40 }
 0x837   : > { %v2481_v26 = vpop.xlane.xlu0 %2480 }
 0x838   : > { %v2489_v9 = vsub.f32 %v5424_v41, %v2481_v26  ;;  %2872 = vadd.xlane.f32.xlu0 %v2871_v1 }
 0x83a   : > { %v2504_v6 = vmul.f32 1.442695, %v2489_v9 }
 0x83b   : > { %v2843_v27 = vpop.xlane.xlu0 %2842 }
 0x83c   : > { %4539 = vpow2.f32 %v2504_v6  ;;  %v2851_v32 = vsub.f32 %v5450_v61, %v2843_v27  ;;  %2869 = vadd.xlane.f32.xlu0 %v2868_v42 }
 0x83d   : > { %4541 = vpow2.f32 %v2860_v4 }
 0x83e   : > { %v5517_v7 = vpop.eup %4533  ;;  %v2866_v10 = vmul.f32 1.442695, %v2851_v32 }
 0x83f   : > { %v2840_v11 = vpop.xlane.xlu0 %2839  ;;  %v2521_v41 = vsel %vm2457_vm4, %v5517_v7, 0.0  ;;  %v5523_v23 = vpop.eup %4535 }
 0x840   : > { %v2850_v45 = vsub.f32 %v5453_v0, %v2840_v11  ;;  %2522 = vadd.xlane.f32.xlu1 %v2521_v41  ;;  %2878 = vadd.xlane.f32.xlu0 %v2877_v12  ;;  %4543 = vpow2.f32 %v2866_v10  ;;  %v2874_v46 = vsel %vm2457_vm4, %v5523_v23, 0.0  ;;  %v5528_v47 = vpop.eup %4537 }
 0x841   : > { %v2883_v28 = vsel %vm2457_vm4, %v5528_v47, 0.0 }
 0x842   : > { %v2864_v61 = vmul.f32 1.442695, %v2850_v45 }
 0x843   : > { %v2917_v24 = vpop.permute.xlu0 %2916 }
 0x844   : > { %2875 = vadd.xlane.f32.xlu0 %v2874_v46  ;;  %4124 = vmatprep.mubr.msk.f32.mxu1 %vm2457_vm4, %v2917_v24  ;;  %4545 = vpow2.f32 %v2864_v61 }
 0x845   : > { %4547 = vpow2.f32 %v2496_v37 }
 0x846   : > { %v5531_v48 = vpop.eup %4539  ;;  %4549 = vpow2.f32 %v2498_v3 }
 0x847   : > { %v2527_v0 = vsel %vm2457_vm4, %v5531_v48, 0.0  ;;  %v5537_v29 = vpop.eup %4541  ;;  %4551 = vpow2.f32 %v2502_v13 }
 0x848   : > { %2884 = vadd.xlane.f32.xlu0 %v2883_v28  ;;  %2528 = vadd.xlane.f32.xlu1 %v2527_v0  ;;  %v2880_v31 = vsel %vm2457_vm4, %v5537_v29, 0.0 }
 0x84a   : > { %v5541_v33 = vpop.eup %4543 }
 0x84b   : > { %v2889_v34 = vsel %vm2457_vm4, %v5541_v33, 0.0 }
 0x84c   : > { %2881 = vadd.xlane.f32.xlu0 %v2880_v31 }
 0x84e   : > { %v5545_v54 = vpop.eup %4545 }
 0x84f   : > { %v2886_v15 = vsel %vm2457_vm4, %v5545_v54, 0.0  ;;  %v5557_v16 = vpop.eup %4547 }
 0x850   : > { %2890 = vadd.xlane.f32.xlu0 %v2889_v34  ;;  %v2515_v19 = vsel %vm2457_vm4, %v5557_v16, 0.0  ;;  %v5561_v22 = vpop.eup %4549 }
 0x851   : > { %v2518_v39 = vsel %vm2457_vm4, %v5561_v22, 0.0  ;;  %v5565_v35 = vpop.eup %4551 }
 0x852   : > { %v2524_v38 = vsel %vm2457_vm4, %v5565_v35, 0.0 }
 0x854   : > { %2887 = vadd.xlane.f32.xlu0 %v2886_v15 }
 0x86a   : > { %2922 = vrot.lane.b32.xlu0 %v5394_v20, %s4756_s25 }
 0x889   : > { %2516 = vadd.xlane.f32.xlu0 %v2515_v19 }
 0x88d   : > { %2519 = vadd.xlane.f32.xlu0 %v2518_v39 }
 0x891   : > { %2525 = vadd.xlane.f32.xlu0 %v2524_v38 }
 0x8bd   : > { %v2511_v36 = vpop.xlane.xlu0 %2510 }
 0x8be   : > { %4553 = vrcp.f32 %v2511_v36 }
 0x8c1   : > { %v2508_v5 = vpop.xlane.xlu0 %2507 }
 0x8c2   : > { %4555 = vrcp.f32 %v2508_v5 }
 0x8c5   : > { %v2873_v63 = vpop.xlane.xlu0 %2872 }
 0x8c6   : > { %4557 = vrcp.f32 %v2873_v63 }
 0x8c8   : > { %v4554_v49 = vpop.eup %4553 }
 0x8c9   : > { %v2870_v25 = vpop.xlane.xlu0 %2869  ;;  %v2547_v58 = vmul.f32 %v4554_v49, %v5488_v8 }
 0x8ca   : > { %4559 = vrcp.f32 %v2870_v25 }
 0x8cc   : > { %v4556_v50 = vpop.eup %4555 }
 0x8cd   : > { %v2879_v52 = vpop.xlane.xlu0 %2878  ;;  %v2546_v53 = vmul.f32 %v4556_v50, %v5493_v43 }
 0x8ce   : > { %4561 = vrcp.f32 %v2879_v52 }
 0x8cf   : > { %v4340_v59 = vpack.c.bf16 %v2547_v58, %v2546_v53  ;;  %v4585_v58 = vld [vmem:[%s5201_s19 + $0x8] sm:$0xff] }
 0x8d0   : > { %v4558_v62 = vpop.eup %4557 }
 0x8d1   : > { %v2876_v40 = vpop.xlane.xlu0 %2875  ;;  %4342 = vmatprep.subr.msk.bf16.mxu0 %vm5573_vm5, %v4340_v59  ;;  %v2909_v26 = vmul.f32 %v4558_v62, %v5503_v60 }
 0x8d2   : > { %4563 = vrcp.f32 %v2876_v40  ;;  %4345 = vmatpush3.bf16.xpose.msk.msra.mxu0 %vm5573_vm5, %v4340_v59  ;;  %v4587_v59 = vld [vmem:[%s5201_s19 + $0x10] sm:$0xff]  ;;  %v4588_v40 = vld [vmem:[%s5201_s19 + $0x18] sm:$0xff]  ;;  %s561_s19 = scalar_lea.vmem [#allocation8], %s5019_s14 }
 0x8d3   : > { %s3196_s29 = sshll.u32 %s561_s19, 4  ;;  %s5657_s29 = int_to_ptr.vmem [resolvable:$true] %s3196_s29 }
 0x8d4   : > { %v4560_v43 = vpop.eup %4559  ;;  %s4677_s16 = scalar_lea.vmem %s5657_s29, 512  ;;  %p4684_p5 = scmp.lt.s32.totalorder %s5657_s29, %s4682_s24 }
 0x8d5   : > { %v2885_v55 = vpop.xlane.xlu0 %2884  ;;  %v2908_v8 = vmul.f32 %v4560_v43, %v5509_v2  ;;  %p4678_p11 = scmp.ne.s32.totalorder %s5657_s29, %s4677_s16  ;;  %p4685_p10 = scmp.lt.s32.totalorder %s4683_s15, %s4677_s16 }
 0x8d6   : > { %4565 = vrcp.f32 %v2885_v55 }
 0x8d7   : > { %v4372_v1 = vpack.c.bf16 %v2909_v26, %v2908_v8  ;;  %p4679_p4 = pnand %p4678_p11, %p5754_p13  ;;  %p4686_p8 = por %p4685_p10, %p4684_p5 }
 0x8d8   : > { %v4562_v4 = vpop.eup %4561 }
 0x8d9   : > { %4374 = vmatprep.subr.msk.bf16.mxu1 %vm5573_vm5, %v4372_v1  ;;  %v2882_v9 = vpop.xlane.xlu0 %2881  ;;  %v2911_v32 = vmul.f32 %v4562_v4, %v5514_v30  ;;  %p4680_p2 = pneg %p4679_p4 }
 0x8da   : > { %4567 = vrcp.f32 %v2882_v9  ;;  %4377 = vmatpush3.bf16.xpose.msk.msra.mxu1 %vm5573_vm5, %v4372_v1 }
 0x8db   : > { %p4687_p7 = pnand %p4686_p8, %p4680_p2 }
 0x8dc   : > { %v4564_v6 = vpop.eup %4563 }
 0x8dd   : > { %v2891_v27 = vpop.xlane.xlu0 %2890  ;;  %v2910_v42 = vmul.f32 %v4564_v6, %v5523_v23 }
 0x8de   : > { %4569 = vrcp.f32 %v2891_v27 }
 0x8df   : > { %v4378_v2 = vpack.c.bf16 %v2911_v32, %v2910_v42 }
 0x8e0   : > { %v4566_v10 = vpop.eup %4565 }
 0x8e1   : > { %4380 = vmatprep.subr.msk.bf16.mxu1 %vm5573_vm5, %v4378_v2  ;;  %v2888_v60 = vpop.xlane.xlu0 %2887  ;;  %v2913_v12 = vmul.f32 %v4566_v10, %v5528_v47  ;;  %v2919_v47 = vpop.permute.xlu1 %2918 }
 0x8e2   : > { %4571 = vrcp.f32 %v2888_v60  ;;  %4383 = vmatpush3.bf16.xpose.msk.msra.mxu1 %vm5573_vm5, %v4378_v2 }
 0x8e4   : > { %v4568_v11 = vpop.eup %4567 }
 0x8e5   : > { %v2912_v41 = vmul.f32 %v4568_v11, %v5537_v29  ;;  %v2921_v28 = vpop.permute.xlu1 %2920  ;;  %v2923_v0 = vpop.permute.xlu0 %2922 }
 0x8e7   : > { %v4384_v45 = vpack.c.bf16 %v2913_v12, %v2912_v41  ;;  %v1894_v41 = vld [vmem:[%s5633_s21 + $0x8] sm:$0xff]  ;;  %v1895_v12 = vld [vmem:[%s5633_s21 + $0x10] sm:$0xff] }
 0x8e8   : > { %v4570_v30 = vpop.eup %4569 }
 0x8e9   : > { %4386 = vmatprep.subr.msk.bf16.mxu1 %vm5573_vm5, %v4384_v45  ;;  %v2915_v24 = vmul.f32 %v4570_v30, %v5541_v33  ;;  %v2514_v29 = vpop.xlane.xlu1 %2513 }
 0x8ea   : > { %4389 = vmatpush3.bf16.xpose.msk.msra.mxu1 %vm5573_vm5, %v4384_v45  ;;  %4573 = vrcp.f32 %v2514_v29  ;;  %v1896_v45 = vld [vmem:[%s5633_s21 + $0x18] sm:$0xff] }
 0x8ec   : > { %v4572_v23 = vpop.eup %4571 }
 0x8ed   : > { %v2914_v61 = vmul.f32 %v4572_v23, %v5545_v54  ;;  %v2523_v31 = vpop.xlane.xlu1 %2522 }
 0x8ef   : > { %v4390_v46 = vpack.c.bf16 %v2915_v24, %v2914_v61 }
 0x8f1   : > { %4392 = vmatprep.subr.msk.bf16.mxu1 %vm5573_vm5, %v4390_v46  ;;  %v2529_v54 = vpop.xlane.xlu1 %2528 }
 0x8f2   : > { %4395 = vmatpush3.bf16.xpose.msk.msra.mxu1 %vm5573_vm5, %v4390_v46 }
 0x8f4   : > { %v4574_v37 = vpop.eup %4573 }
 0x8f5   : > { %v2548_v13 = vmul.f32 %v4574_v37, %v5496_v44 }
 0x8f9   : > { %4125 = vmatmul.mubr.msk.f32.vlgmr.msra.gmra.mrb[44].mxu1 %vm2457_vm4, %v2919_v47 }
 0x8fa   : > { %4127 = vmatprep.mubr.msk.f32.mxu1 %vm2457_vm4, %v2921_v28 }
 0x8fd   : > { %4128 = vmatmul.mubr.msk.f32.gmra.mrb[46].mxu1 %vm2457_vm4, %v2923_v0 }
 0x916   : > { %v2517_v33 = vpop.xlane.xlu0 %2516 }
 0x917   : > { %4575 = vrcp.f32 %v2517_v33 }
 0x918   : > { %4577 = vrcp.f32 %v2523_v31 }
 0x91a   : > { %v2520_v34 = vpop.xlane.xlu0 %2519 }
 0x91b   : > { %4579 = vrcp.f32 %v2520_v34 }
 0x91c   : > { %4581 = vrcp.f32 %v2529_v54 }
 0x91e   : > { %v2526_v15 = vpop.xlane.xlu0 %2525 }
 0x91f   : > { %4583 = vrcp.f32 %v2526_v15 }
 0x921   : > { %v4576_v3 = vpop.eup %4575 }
 0x922   : > { %v2549_v19 = vmul.f32 %v4576_v3, %v5557_v16  ;;  %v4578_v39 = vpop.eup %4577 }
 0x923   : > { %v2551_v63 = vmul.f32 %v4578_v39, %v5517_v7 }
 0x924   : > { %v4346_v38 = vpack.c.bf16 %v2549_v19, %v2548_v13 }
 0x925   : > { %v4580_v36 = vpop.eup %4579 }
 0x926   : > { %4348 = vmatprep.subr.msk.bf16.mxu0 %vm5573_vm5, %v4346_v38  ;;  %v2550_v5 = vmul.f32 %v4580_v36, %v5561_v22  ;;  %v4582_v25 = vpop.eup %4581 }
 0x927   : > { %4351 = vmatpush3.bf16.xpose.msk.msra.mxu0 %vm5573_vm5, %v4346_v38  ;;  %v2553_v16 = vmul.f32 %v4582_v25, %v5531_v48 }
 0x928   : > { %v4352_v49 = vpack.c.bf16 %v2551_v63, %v2550_v5 }
 0x929   : > { %v4584_v50 = vpop.eup %4583 }
 0x92a   : > { %4354 = vmatprep.subr.msk.bf16.mxu0 %vm5573_vm5, %v4352_v49  ;;  %v2552_v44 = vmul.f32 %v4584_v50, %v5565_v35  ;;  %v1893_v35 = vld [vmem:[%s5633_s21] sm:$0xff] }
 0x92c   : > { %v4358_v52 = vpack.c.bf16 %v2553_v16, %v2552_v44 }
 0x92f   : > { %4357 = vmatpush3.bf16.xpose.msk.msra.mxu0 %vm5573_vm5, %v4352_v49 }
 0x930   : > { %4360 = vmatprep.subr.msk.bf16.mxu0 %vm5573_vm5, %v4358_v52 }
 0x937   : > { %4363 = vmatpush3.bf16.xpose.msk.msra.mxu0 %vm5573_vm5, %v4358_v52 }
 0x93e   : > { %4083 = vmatmul.mubr.msk.f32.vlgmr.msra.gmra.mrb[44].mxu0 %vm2457_vm4, %v5390_v14 }
 0x93f   : > { %4085 = vmatprep.mubr.msk.f32.mxu0 %vm2457_vm4, %v5396_v21 }
 0x942   : > { %4086 = vmatmul.mubr.msk.f32.gmra.mrb[46].mxu0 %vm2457_vm4, %v5394_v20  ;;  %v4757_v20 = vmov 2  }
 0x943   : > { %4138 = vmatprep.mubr.msk.f32.mxu0 %vm809_vm0, %v1893_v35  ;;  %4503 = vset.pattern.permute.xlu1 %v4757_v20 }
 0x944   : > { %4504 = vset.pattern.permute.xlu0 %v4757_v20 }
 0x9cc   : > { %v4126_v7 = vpop.f32.mrb[44].mxu1 }
 0x9cd   : > { %v3022_v48 = vpop.f32.mrb[45].mxu1 }
 0x9ce   : > { %v4493_v22 = vpack.i.bf16 %v4126_v7, %v3022_v48 }
 0x9d0   : > { %4494 = vrot.lane.b32.xlu0 %v4493_v22, %s4756_s25  ;;  %v4129_v14 = vpop.f32.mrb[46].mxu1 }
 0x9d1   : > { %v3032_v21 = vpop.f32.mrb[47].mxu1 }
 0x9d2   : > { %v4498_v53 = vpack.i.bf16 %v4129_v14, %v3032_v21 }
 0x9d4   : > { %4499 = vrot.lane.b32.xlu1 %v4498_v53, %s4756_s25  ;;  %3066 = vperm.xlu0 %4504, %v4585_v58  }
 0x9d8   : > { %3062 = vperm.xlu1 %4503, %v4586_v51  }
 0x9dc   : > { %3070 = vperm.xlu1 %4503, %v4587_v59  }
 0x9e0   : > { %3074 = vperm.xlu1 %4503, %v4588_v40  }
 0xa11   : > { %v4084_v62 = vpop.f32.mrb[44].mxu0 }
 0xa12   : > { %v2656_v43 = vpop.f32.mrb[45].mxu0 }
 0xa15   : > { %v4087_v55 = vpop.f32.mrb[46].mxu0 }
 0xa16   : > { %v2666_v8 = vpop.f32.mrb[47].mxu0 }
 0xa42   : > { %v4495_v26 = vpop.permute.xlu0 %4494 }
 0xa43   : > { %v4497_v1 = vunpack.i.h.bf16 %v4495_v26  ;;  %v4496_v9 = vunpack.i.l.bf16 %v4495_v26 }
 0xa45   : > { %v3057_v4 = vsel %vm2457_vm4, %v2656_v43, %v4496_v9  ;;  %v3058_v6 = vsel %vm2457_vm4, %v4084_v62, %v4497_v1 }
 0xa46   : > { %v4500_v27 = vpop.permute.xlu1 %4499  ;;  %v4396_v42 = vpack.c.bf16 %v3058_v6, %v3057_v4 }
 0xa47   : > { %v4502_v32 = vunpack.i.h.bf16 %v4500_v27  ;;  %v4501_v2 = vunpack.i.l.bf16 %v4500_v27 }
 0xa48   : > { %4397 = vmatprep.subr.bf16.mxu0 %v4396_v42 }
 0xa49   : > { %4399 = vmatpush3.bf16.msra.mxu0 %v4396_v42  ;;  %v3059_v60 = vsel %vm2457_vm4, %v2666_v8, %v4501_v2  ;;  %v3060_v10 = vsel %vm2457_vm4, %v4087_v55, %v4502_v32 }
 0xa4a   : > { %v4400_v11 = vpack.c.bf16 %v3060_v10, %v3059_v60 }
 0xa4c   : > { %4401 = vmatprep.subr.bf16.mxu0 %v4400_v11 }
 0xa4d   : > { %4403 = vmatpush3.bf16.msra.mxu0 %v4400_v11 }
 0xa50   : > { %4139 = vmatmul.mubr.msk.f32.vlgmr.msra.gmra.mrb[48].mxu0 %vm809_vm0, %v1894_v41 }
 0xa51   : > { %4141 = vmatprep.mubr.msk.f32.mxu0 %vm809_vm0, %v1895_v12 }
 0xa53   : > { %v3067_v61 = vpop.permute.xlu0 %3066 }
 0xa54   : > { %4142 = vmatmul.mubr.msk.f32.gmra.mrb[50].mxu0 %vm809_vm0, %v1896_v45 }
 0xa57   : > { %v3063_v30 = vpop.permute.xlu1 %3062 }
 0xa5b   : > { %v3071_v23 = vpop.permute.xlu1 %3070 }
 0xa5f   : > { %v3075_v29 = vpop.permute.xlu1 %3074 }
 0xb23   : > { %v4140_v24 = vpop.f32.mrb[48].mxu0 }
 0xb24   : > { %v3161_v46 = vadd.f32 %v4140_v24, %v3067_v61  ;;  %v3155_v47 = vpop.f32.mrb[49].mxu0 }
 0xb25   : > { %v3156_v28 = vadd.f32 %v3155_v47, %v3063_v30 }
 0xb26   : > { %v3175_v0 = vadd.f32 %v3161_v46, %v5302_v17 }
 0xb27   : > { %v3174_v31 = vadd.f32 %v3156_v28, %v5304_v18  ;;  %v4143_v33 = vpop.f32.mrb[50].mxu0 }
 0xb28   : > { %3179 = vst [vmem:[%s561_s19 + $0x8] sm:$0xff] %v3175_v0  ;;  %v3171_v34 = vadd.f32 %v4143_v33, %v3075_v29  ;;  %v3165_v54 = vpop.f32.mrb[51].mxu0 }
 0xb29   : > { %3178 = vst [vmem:[%s561_s19] sm:$0xff] %v3174_v31  ;;  %v3166_v15 = vadd.f32 %v3165_v54, %v3071_v23 }
 0xb2a   : > { %v3177_v17 = vadd.f32 %v3171_v34, %v5332_v56 }
 0xb2b   : > { %v3176_v18 = vadd.f32 %v3166_v15, %v5335_v57 }
 0xb2c   : > { %3181 = vst [vmem:[%s561_s19 + $0x18] sm:$0xff] %v3177_v17 }
 0xb2d   : > { %3180 = vst [vmem:[%s561_s19 + $0x10] sm:$0xff] %v3176_v18 }
 0xb2e   : > { %4690 = shalt.err (!%p4687_p7)
}
 0xb2f   : > { %s4691_s28 = scalar_lea.hbm %s5663_s22, 512  ;;  %s4695_s21 = scalar_lea.hbm %s5721_s11, 1024 }
 0xb30   : > { %p4692_p3 = scmp.ne.s32.totalorder %s5663_s22, %s4691_s28  ;;  %p4696_p0 = scmp.lt.u32.totalorder %s5663_s22, %s5721_s11 }
 0xb31   : > { %p4697_p9 = scmp.lt.u32.totalorder %s4695_s21, %s4691_s28  ;;  %p4699_p11 = scmp.lt.u32.totalorder %s4691_s28, %s5663_s22 }
 0xb32   : > { %p4693_p12 = pnand %p4692_p3, %p5754_p13 }
 0xb33   : > { %p4698_p1 = por %p4697_p9, %p4696_p0 }
 0xb34   : > { %p4694_p6 = pneg %p4693_p12 }
 0xb35   : > { %p4700_p4 = por %p4699_p11, %p4698_p1 }
 0xb37   : > { %p4701_p2 = pnand %p4700_p4, %p4694_p6 }
 0xb39   : > { %4704 = shalt.err (!%p4701_p2)
}
 0xb3a   : > { %s4759_s14 = smov 128   ;;  %s4760_s7 = smov 8  }
 0xb3b   : > { %4412 = dma.vmem_to_hbm [thread:$0]  (%p5754_p13), %s5657_s29, 512, %s5663_s22, %s5668_s23, %s4759_s14, %s4759_s14, %s4760_s7  }
 0xb3c PF: > { %s3211_s16 = sand.u32 1, %s4735_s17   ;;  %p5755_p5 = scmp.ne.s32.totalorder %s5741_s12, 0 }
 0xb3d   : > { %p5756_p10 = scmp.ge.s32.totalorder %s4747_s20, 2  ;;  %s3212_s26 = scalar_lea.sflag [#allocation4], %s3211_s16 }
 0xb3f   : > { %p4426_p8 = pnand %p5756_p10, %p5755_p5 }
 0xb41   : > { %4730 = dma.done.wait (!%p4426_p8), %s3212_s26, 512  }
 0xb42   : > { %4732 = vsyncadd (!%p4426_p8), %s3212_s26, 4294966784  ;;  %s5757_s20 = sld [smem:[#allocation13_spill]]  ;;  %s5758_s24 = sld [smem:[#allocation12_spill]] }
 0xb43   : > { %s5759_s19 = sld [smem:[#allocation14_spill]]  ;;  %s5760_s17 = smov %s4739_s18 }
 0xb48   : > { %p25_p7 = scmp.ge.s32.totalorder %s5757_s20, 4   ;;  %s5761_s18 = smov %s5758_s24 }
 0xb4a   :  { %27 = sbr.rel (!%p25_p7) target bundleno = 8 (0x8), region = 143 }
 0xb51   :  { %3217 = vsyncpa [#allocation3], 1 }
 0xb52   :  { %3219 = vsyncpa [#allocation3 + $0x1], 1 }
 0xb53   :  { %3220 = vsyncpa [#allocation6], 1 }
 0xb54   :  { %3222 = vsyncpa [#allocation6 + $0x1], 1 }
 0xb55   :  { %3223 = vsyncpa [#allocation4], 1 }
 0xb56   :  { %3225 = vsyncpa [#allocation4 + $0x1], 1 }

</bundles_post_ra>
